<compile_context>
chip_gen: v6e
topology: v6e:2x2x1
jax: 0.10.0
libtpu: 0.0.40
codegen_flags: <defaults>
</compile_context>

<pallas_src>
import functools
import math

import jax
import jax.numpy as jnp
from jax.experimental import pallas as pl
from jax.experimental.pallas import tpu as pltpu


def _attn_pool_kernel(x_ref, wq_ref, wk_ref, wv_ref, wo_ref,
                      bq_ref, bk_ref, bv_ref, bo_ref,
                      g_ref, gt_ref, kmask_ref, o_ref,
                      *, num_heads: int, b_tile: int, l_pad: int):
    """One grid step = b_tile pooled-attention problems.

    x_ref:   (b_tile * l_pad, C) bf16 — flattened, length-padded token sequences.
    w*_ref:  bf16 weights pre-transposed to (in, out); b*_ref: f32 biases.
    g_ref:   (C, H) 0/1 bf16 head-grouping matrix; gt_ref: (H, C) its transpose.
    kmask_ref: (l_pad, 1) f32 additive mask (0 real rows, -1e30 padded rows).
    o_ref:   (b_tile, out_pad) output block.
    """
    C = wq_ref.shape[0]
    head_dim = C // num_heads
    scale = float(head_dim) ** -0.5

    x = x_ref[...]                                          # (b_tile*l_pad, C) bf16

    # Batched K / V projections over all rows: bf16 MXU, f32 accumulation.
    k = jnp.dot(x, wk_ref[...], preferred_element_type=jnp.float32) + bk_ref[...]
    v = jnp.dot(x, wv_ref[...], preferred_element_type=jnp.float32) + bv_ref[...]

    # Only row 0 of each sequence (the pooled mean token) is queried: gather the
    # b_tile pool rows and do a single batched q projection.
    xq = jnp.concatenate([x[b * l_pad:b * l_pad + 1, :] for b in range(b_tile)],
                         axis=0)                            # (b_tile, C) bf16
    q = (jnp.dot(xq, wq_ref[...], preferred_element_type=jnp.float32)
         + bq_ref[...]) * scale                             # (b_tile, C) f32

    G = g_ref[...]                                          # (C, H) bf16
    Gt = gt_ref[...]                                        # (H, C) bf16
    kmask = kmask_ref[...]                                  # (l_pad, 1) f32

    # Attention core per batch element (tiny vs. the projections above).
    attn_rows = []
    for b in range(b_tile):
        k_b = k[b * l_pad:(b + 1) * l_pad, :]               # (l_pad, C) f32
        v_b = v[b * l_pad:(b + 1) * l_pad, :]               # (l_pad, C) f32
        q_b = q[b:b + 1, :]                                  # (1, C) f32

        # Per-head scores for the single query: s[l, h] = q_h . k_h[l]
        s_b = jnp.dot((k_b * q_b).astype(jnp.bfloat16), G,
                      preferred_element_type=jnp.float32) + kmask   # (l_pad, H)
        m_b = jnp.max(s_b, axis=0, keepdims=True)
        p_b = jnp.exp(s_b - m_b)
        p_b = p_b * pl.reciprocal(jnp.sum(p_b, axis=0, keepdims=True), approx=True)

        # attn[c] = sum_l p[l, head(c)] * v[l, c]
        pf_b = jnp.dot(p_b.astype(jnp.bfloat16), Gt,
                       preferred_element_type=jnp.float32)           # (l_pad, C)
        attn_rows.append(jnp.sum(pf_b * v_b, axis=0, keepdims=True))  # (1, C)

    attn = jnp.concatenate(attn_rows, axis=0)               # (b_tile, C) f32

    # Output projection (lane-padded to a multiple of 128 -> unmasked lane store).
    out = jnp.dot(attn.astype(jnp.bfloat16), wo_ref[...],
                  preferred_element_type=jnp.float32) + bo_ref[...]
    o_ref[...] = out.astype(o_ref.dtype)                    # (b_tile, out_pad)


def _pick_b_tile(n: int, l_pad: int) -> int:
    """4-8 batch elements per step (~256-512 MXU rows), grid >= 2 when possible
    so the ('parallel',) batch axis can split across v7x's two TensorCores."""
    b = min(8, n, max(1, 512 // l_pad))
    while b > 1 and -(-n // b) < 2:     # ceil(n / b) < 2
        b //= 2
    return max(1, b)


def _vmem_limit_bytes(C, out_pad, num_heads, b_tile, l_pad) -> int:
    """Generation-aware VMEM cap: ask for what the kernel needs (single-buffered
    bf16 weights + double-buffered activation tiles + f32 intermediates, with
    headroom), clamped to ~85% of physical VMEM (leaves compiler scratch room)."""
    try:
        cap = int(getattr(pltpu.get_tpu_info(), "vmem_capacity_bytes",
                          128 * 1024 * 1024))
    except Exception:
        cap = 128 * 1024 * 1024
    rows = b_tile * l_pad
    weights = 2 * (3 * C * C + C * out_pad + 2 * C * num_heads)   # bf16, 1 copy
    biases = 4 * (3 * C + out_pad + l_pad)                        # f32
    io_tiles = 2 * 2 * rows * C + 2 * 4 * b_tile * out_pad        # dbl-buffered in/out
    interm = 4 * 4 * rows * C                                     # k, v + live f32 values
    est = weights + biases + io_tiles + interm
    return int(min(max(2 * est, 32 * 1024 * 1024), int(0.85 * cap)))


def attention_pool2d(x, params, num_heads: int):
    """x: (N, C, H, W). Returns (N, out_dim): pooled-token multi-head attention."""
    pos_emb, wq, bq, wk, bk, wv, bv, wc, bc = (
        params["pos_emb"], params["wq"], params["bq"], params["wk"], params["bk"],
        params["wv"], params["bv"], params["wc"], params["bc"])

    N, C, H, W = x.shape
    HW = H * W
    L = HW + 1
    out_dim = wc.shape[0]
    out_pad = ((out_dim + 127) // 128) * 128        # lane-dense output width
    L_pad = ((L + 7) // 8) * 8                      # sublane-aligned sequence length
    b_tile = _pick_b_tile(N, L_pad)
    grid_n = -(-N // b_tile)
    N_pad = grid_n * b_tile

    # --- glue (XLA): NCHW -> (N, HW, C), prepend spatial mean token, add pos emb ---
    x_seq = x.reshape(N, C, HW).transpose(0, 2, 1)                      # (N, HW, C)
    x_seq = jnp.concatenate([x_seq.mean(axis=1, keepdims=True), x_seq], axis=1)
    x_seq = (x_seq + pos_emb[None, :, :]).astype(jnp.float32)           # (N, L, C)
    # Pad sequence length / batch; padded key rows are masked out in-kernel.
    x_seq = jnp.pad(x_seq, ((0, N_pad - N), (0, L_pad - L), (0, 0)))
    x_flat = x_seq.reshape(N_pad * L_pad, C).astype(jnp.bfloat16)       # bf16 tile feed

    # --- resident weights: bf16, pre-transposed to (in, out); biases stay f32 ---
    wq_t = wq.T.astype(jnp.bfloat16)
    wk_t = wk.T.astype(jnp.bfloat16)
    wv_t = wv.T.astype(jnp.bfloat16)
    wo_t = jnp.zeros((C, out_pad), jnp.bfloat16).at[:, :out_dim].set(
        wc.T.astype(jnp.bfloat16))
    bq2 = bq.reshape(1, C).astype(jnp.float32)
    bk2 = bk.reshape(1, C).astype(jnp.float32)
    bv2 = bv.reshape(1, C).astype(jnp.float32)
    bo2 = jnp.zeros((1, out_pad), jnp.float32).at[:, :out_dim].set(
        bc.astype(jnp.float32))

    # --- head-grouping matrices, built once (hoisted out of the kernel) ---
    head_dim = C // num_heads
    col_head = jnp.arange(C, dtype=jnp.int32) // head_dim
    G = (col_head[:, None] == jnp.arange(num_heads, dtype=jnp.int32)[None, :]
         ).astype(jnp.bfloat16)                     # (C, H)
    Gt = G.T                                        # (H, C)

    # Additive mask: 0 for real key rows, -1e30 for length-padding rows.
    kmask = jnp.where(jnp.arange(L_pad) < L, 0.0, -1e30
                      ).astype(jnp.float32).reshape(L_pad, 1)

    kernel = functools.partial(_attn_pool_kernel, num_heads=num_heads,
                               b_tile=b_tile, l_pad=L_pad)
    vmem_limit = _vmem_limit_bytes(C, out_pad, num_heads, b_tile, L_pad)

    def resident():
        # Whole array placed in VMEM once (single-buffered, not pipelined).
        return pl.BlockSpec(memory_space=pltpu.MemorySpace.VMEM)

    out3 = pl.pallas_call(
        kernel,
        out_shape=jax.ShapeDtypeStruct((grid_n, b_tile, out_pad), x.dtype),
        grid_spec=pltpu.PrefetchScalarGridSpec(
            num_scalar_prefetch=0,
            grid=(grid_n,),
            in_specs=[
                # per-step activation tile: b_tile flattened sequences
                pl.BlockSpec((b_tile * L_pad, C), lambda i: (i, 0)),
                resident(),   # Wq^T
                resident(),   # Wk^T
                resident(),   # Wv^T
                resident(),   # Wo^T (lane-padded)
                resident(),   # bq
                resident(),   # bk
                resident(),   # bv
                resident(),   # bo (lane-padded)
                resident(),   # G  (C, H)
                resident(),   # Gt (H, C)
                resident(),   # pad-row mask
            ],
            out_specs=pl.BlockSpec((None, b_tile, out_pad), lambda i: (i, 0, 0)),
        ),
        compiler_params=pltpu.CompilerParams(
            dimension_semantics=("parallel",),
            vmem_limit_bytes=vmem_limit),
    )(x_flat, wq_t, wk_t, wv_t, wo_t, bq2, bk2, bv2, bo2, G, Gt, kmask)

    return out3.reshape(N_pad, out_pad)[:N, :out_dim]


def _reference(x, params, num_heads):
    """Pure-JAX f32 reference mirroring multi_head_attention_forward semantics."""
    pos_emb, wq, bq, wk, bk, wv, bv, wc, bc = (
        params["pos_emb"], params["wq"], params["bq"], params["wk"], params["bk"],
        params["wv"], params["bv"], params["wc"], params["bc"])
    N, C, H, W = x.shape
    L = H * W + 1
    head_dim = C // num_heads
    xf = x.reshape(N, C, H * W).transpose(2, 0, 1)
    xf = jnp.concatenate([xf.mean(axis=0, keepdims=True), xf], axis=0)
    xf = xf + pos_emb[:, None, :]                               # (L, N, C)
    q = xf @ wq.T + bq
    k = xf @ wk.T + bk
    v = xf @ wv.T + bv
    q = q * (head_dim ** -0.5)

    def split(t):
        return t.reshape(L, N * num_heads, head_dim).transpose(1, 0, 2)

    qh, kh, vh = split(q), split(k), split(v)
    s = jnp.einsum("bld,bmd->blm", qh, kh)
    p = jax.nn.softmax(s, axis=-1)
    o = jnp.einsum("blm,bmd->bld", p, vh)                        # (N*H, L, D)
    o = o.transpose(1, 0, 2).reshape(L, N, C)
    o = o @ wc.T + bc
    return o[0]                                                  # pooled token


if __name__ == "__main__":
    # Small shapes consistent with the module's forward
    spacial_dim = 4
    embed_dim = 32
    num_heads = 4
    output_dim = 16
    N = 16                      # exercises the batched (b_tile>1) grid path
    H = W = spacial_dim

    key = jax.random.PRNGKey(0)
    ks = jax.random.split(key, 10)

    params = {
        "pos_emb": jax.random.normal(ks[0], (spacial_dim ** 2 + 1, embed_dim),
                                     jnp.float32) / math.sqrt(embed_dim),
        "wq": jax.random.normal(ks[1], (embed_dim, embed_dim), jnp.float32) * 0.05,
        "bq": jax.random.normal(ks[2], (embed_dim,), jnp.float32) * 0.05,
        "wk": jax.random.normal(ks[3], (embed_dim, embed_dim), jnp.float32) * 0.05,
        "bk": jax.random.normal(ks[4], (embed_dim,), jnp.float32) * 0.05,
        "wv": jax.random.normal(ks[5], (embed_dim, embed_dim), jnp.float32) * 0.05,
        "bv": jax.random.normal(ks[6], (embed_dim,), jnp.float32) * 0.05,
        "wc": jax.random.normal(ks[7], (output_dim, embed_dim), jnp.float32) * 0.05,
        "bc": jax.random.normal(ks[8], (output_dim,), jnp.float32) * 0.05,
    }

    x = jax.random.normal(ks[9], (N, embed_dim, H, W), jnp.float32)

    out = attention_pool2d(x, params, num_heads)
    out = jax.block_until_ready(out)

    ref = _reference(x, params, num_heads)
    assert out.shape == (N, output_dim), out.shape
    max_err = float(jnp.max(jnp.abs(out - ref)))
    # bf16 MXU operands (f32 accumulation) -> loosened parity vs the f32 reference.
    assert jnp.allclose(out, ref, atol=2e-2, rtol=2e-2), max_err

    print("KERNEL_OK")
</pallas_src>

<mosaic_0001>
module attributes {stable_mosaic.version = 11 : i64} {
  func.func @_attn_pool_kernel(%arg0: i32, %arg1: memref<192x32xbf16, #tpu.memory_space<vmem>>, %arg2: memref<32x32xbf16, #tpu.memory_space<vmem>>, %arg3: memref<32x32xbf16, #tpu.memory_space<vmem>>, %arg4: memref<32x32xbf16, #tpu.memory_space<vmem>>, %arg5: memref<32x128xbf16, #tpu.memory_space<vmem>>, %arg6: memref<1x32xf32, #tpu.memory_space<vmem>>, %arg7: memref<1x32xf32, #tpu.memory_space<vmem>>, %arg8: memref<1x32xf32, #tpu.memory_space<vmem>>, %arg9: memref<1x128xf32, #tpu.memory_space<vmem>>, %arg10: memref<32x4xbf16, #tpu.memory_space<vmem>>, %arg11: memref<4x32xbf16, #tpu.memory_space<vmem>>, %arg12: memref<24x1xf32, #tpu.memory_space<vmem>>, %arg13: memref<1x8x128xf32, #tpu.memory_space<vmem>>) attributes {dimension_semantics = [#tpu.dimension_semantics<parallel>], iteration_bounds = array<i64: 2>, scalar_prefetch = 0 : i64, scratch_operands = 0 : i64, tpu.core_type = #tpu.core_type<tc>, window_params = [{transform_indices = @transform_0, window_bounds = array<i64: 192, 32>}, {pipeline_mode = #tpu.pipeline_mode<synchronous>, transform_indices = @transform_1, window_bounds = array<i64: 32, 32>}, {pipeline_mode = #tpu.pipeline_mode<synchronous>, transform_indices = @transform_2, window_bounds = array<i64: 32, 32>}, {pipeline_mode = #tpu.pipeline_mode<synchronous>, transform_indices = @transform_3, window_bounds = array<i64: 32, 32>}, {pipeline_mode = #tpu.pipeline_mode<synchronous>, transform_indices = @transform_4, window_bounds = array<i64: 32, 128>}, {pipeline_mode = #tpu.pipeline_mode<synchronous>, transform_indices = @transform_5, window_bounds = array<i64: 1, 32>}, {pipeline_mode = #tpu.pipeline_mode<synchronous>, transform_indices = @transform_6, window_bounds = array<i64: 1, 32>}, {pipeline_mode = #tpu.pipeline_mode<synchronous>, transform_indices = @transform_7, window_bounds = array<i64: 1, 32>}, {pipeline_mode = #tpu.pipeline_mode<synchronous>, transform_indices = @transform_8, window_bounds = array<i64: 1, 128>}, {pipeline_mode = #tpu.pipeline_mode<synchronous>, transform_indices = @transform_9, window_bounds = array<i64: 32, 4>}, {pipeline_mode = #tpu.pipeline_mode<synchronous>, transform_indices = @transform_10, window_bounds = array<i64: 4, 32>}, {pipeline_mode = #tpu.pipeline_mode<synchronous>, transform_indices = @transform_11, window_bounds = array<i64: 24, 1>}, {transform_indices = @transform_12, window_bounds = array<i64: 1, 8, 128>}]} {
    %c0 = arith.constant 0 : index
    %c0_0 = arith.constant 0 : index
    %0 = vector.load %arg1[%c0, %c0_0] : memref<192x32xbf16, #tpu.memory_space<vmem>>, vector<192x32xbf16>
    %c0_1 = arith.constant 0 : index
    %c0_2 = arith.constant 0 : index
    %1 = vector.load %arg3[%c0_1, %c0_2] : memref<32x32xbf16, #tpu.memory_space<vmem>>, vector<32x32xbf16>
    %cst = arith.constant dense<0.000000e+00> : vector<192x32xf32>
    %2 = tpu.matmul %0, %1, %cst {dimension_numbers = #tpu.dot_dimension_numbers<[1], [0], [0], [1], [0, 0, 1, 1], [], []>} : vector<192x32xbf16>, vector<32x32xbf16>, vector<192x32xf32> -> vector<192x32xf32>
    %c0_3 = arith.constant 0 : index
    %c0_4 = arith.constant 0 : index
    %3 = vector.load %arg7[%c0_3, %c0_4] : memref<1x32xf32, #tpu.memory_space<vmem>>, vector<1x32xf32>
    %4 = vector.broadcast %3 : vector<1x32xf32> to vector<192x32xf32>
    %5 = arith.addf %2, %4 : vector<192x32xf32>
    %c0_5 = arith.constant 0 : index
    %c0_6 = arith.constant 0 : index
    %6 = vector.load %arg4[%c0_5, %c0_6] : memref<32x32xbf16, #tpu.memory_space<vmem>>, vector<32x32xbf16>
    %cst_7 = arith.constant dense<0.000000e+00> : vector<192x32xf32>
    %7 = tpu.matmul %0, %6, %cst_7 {dimension_numbers = #tpu.dot_dimension_numbers<[1], [0], [0], [1], [0, 0, 1, 1], [], []>} : vector<192x32xbf16>, vector<32x32xbf16>, vector<192x32xf32> -> vector<192x32xf32>
    %c0_8 = arith.constant 0 : index
    %c0_9 = arith.constant 0 : index
    %8 = vector.load %arg8[%c0_8, %c0_9] : memref<1x32xf32, #tpu.memory_space<vmem>>, vector<1x32xf32>
    %9 = vector.broadcast %8 : vector<1x32xf32> to vector<192x32xf32>
    %10 = arith.addf %7, %9 : vector<192x32xf32>
    %11 = vector.extract_strided_slice %0 {offsets = [0, 0], sizes = [1, 32], strides = [1, 1]} : vector<192x32xbf16> to vector<1x32xbf16>
    %12 = vector.extract_strided_slice %0 {offsets = [24, 0], sizes = [1, 32], strides = [1, 1]} : vector<192x32xbf16> to vector<1x32xbf16>
    %13 = vector.extract_strided_slice %0 {offsets = [48, 0], sizes = [1, 32], strides = [1, 1]} : vector<192x32xbf16> to vector<1x32xbf16>
    %14 = vector.extract_strided_slice %0 {offsets = [72, 0], sizes = [1, 32], strides = [1, 1]} : vector<192x32xbf16> to vector<1x32xbf16>
    %15 = vector.extract_strided_slice %0 {offsets = [96, 0], sizes = [1, 32], strides = [1, 1]} : vector<192x32xbf16> to vector<1x32xbf16>
    %16 = vector.extract_strided_slice %0 {offsets = [120, 0], sizes = [1, 32], strides = [1, 1]} : vector<192x32xbf16> to vector<1x32xbf16>
    %17 = vector.extract_strided_slice %0 {offsets = [144, 0], sizes = [1, 32], strides = [1, 1]} : vector<192x32xbf16> to vector<1x32xbf16>
    %18 = vector.extract_strided_slice %0 {offsets = [168, 0], sizes = [1, 32], strides = [1, 1]} : vector<192x32xbf16> to vector<1x32xbf16>
    %19 = tpu.concatenate %11, %12, %13, %14, %15, %16, %17, %18 in 0 : vector<1x32xbf16>, vector<1x32xbf16>, vector<1x32xbf16>, vector<1x32xbf16>, vector<1x32xbf16>, vector<1x32xbf16>, vector<1x32xbf16>, vector<1x32xbf16> -> vector<8x32xbf16>
    %c0_10 = arith.constant 0 : index
    %c0_11 = arith.constant 0 : index
    %20 = vector.load %arg2[%c0_10, %c0_11] : memref<32x32xbf16, #tpu.memory_space<vmem>>, vector<32x32xbf16>
    %cst_12 = arith.constant dense<0.000000e+00> : vector<8x32xf32>
    %21 = tpu.matmul %19, %20, %cst_12 {dimension_numbers = #tpu.dot_dimension_numbers<[1], [0], [0], [1], [0, 0, 1, 1], [], []>} : vector<8x32xbf16>, vector<32x32xbf16>, vector<8x32xf32> -> vector<8x32xf32>
    %c0_13 = arith.constant 0 : index
    %c0_14 = arith.constant 0 : index
    %22 = vector.load %arg6[%c0_13, %c0_14] : memref<1x32xf32, #tpu.memory_space<vmem>>, vector<1x32xf32>
    %23 = vector.broadcast %22 : vector<1x32xf32> to vector<8x32xf32>
    %24 = arith.addf %21, %23 : vector<8x32xf32>
    %cst_15 = arith.constant 0.353553385 : f32
    %25 = vector.broadcast %cst_15 : f32 to vector<8x32xf32>
    %26 = arith.mulf %24, %25 : vector<8x32xf32>
    %c0_16 = arith.constant 0 : index
    %c0_17 = arith.constant 0 : index
    %27 = vector.load %arg10[%c0_16, %c0_17] : memref<32x4xbf16, #tpu.memory_space<vmem>>, vector<32x4xbf16>
    %c0_18 = arith.constant 0 : index
    %c0_19 = arith.constant 0 : index
    %28 = vector.load %arg11[%c0_18, %c0_19] : memref<4x32xbf16, #tpu.memory_space<vmem>>, vector<4x32xbf16>
    %c0_20 = arith.constant 0 : index
    %c0_21 = arith.constant 0 : index
    %29 = vector.load %arg12[%c0_20, %c0_21] : memref<24x1xf32, #tpu.memory_space<vmem>>, vector<24x1xf32>
    %30 = vector.extract_strided_slice %5 {offsets = [0, 0], sizes = [24, 32], strides = [1, 1]} : vector<192x32xf32> to vector<24x32xf32>
    %31 = vector.extract_strided_slice %10 {offsets = [0, 0], sizes = [24, 32], strides = [1, 1]} : vector<192x32xf32> to vector<24x32xf32>
    %32 = vector.extract_strided_slice %26 {offsets = [0, 0], sizes = [1, 32], strides = [1, 1]} : vector<8x32xf32> to vector<1x32xf32>
    %33 = vector.broadcast %32 : vector<1x32xf32> to vector<24x32xf32>
    %34 = arith.mulf %30, %33 : vector<24x32xf32>
    %35 = arith.truncf %34 : vector<24x32xf32> to vector<24x32xbf16>
    %cst_22 = arith.constant dense<0.000000e+00> : vector<24x4xf32>
    %36 = tpu.matmul %35, %27, %cst_22 {dimension_numbers = #tpu.dot_dimension_numbers<[1], [0], [0], [1], [0, 0, 1, 1], [], []>} : vector<24x32xbf16>, vector<32x4xbf16>, vector<24x4xf32> -> vector<24x4xf32>
    %37 = vector.broadcast %29 : vector<24x1xf32> to vector<24x4xf32>
    %38 = arith.addf %36, %37 : vector<24x4xf32>
    %cst_23 = arith.constant dense<0xFF800000> : vector<4xf32>
    %39 = vector.multi_reduction <maximumf>, %38, %cst_23 [0] : vector<24x4xf32> to vector<4xf32>
    %40 = vector.shape_cast %39 : vector<4xf32> to vector<1x4xf32>
    %41 = vector.broadcast %40 : vector<1x4xf32> to vector<24x4xf32>
    %42 = arith.subf %38, %41 : vector<24x4xf32>
    %43 = math.exp %42 : vector<24x4xf32>
    %cst_24 = arith.constant dense<0.000000e+00> : vector<4xf32>
    %44 = vector.multi_reduction <add>, %43, %cst_24 [0] : vector<24x4xf32> to vector<4xf32>
    %45 = vector.shape_cast %44 : vector<4xf32> to vector<1x4xf32>
    %46 = tpu.reciprocal %45 {approx = true} : vector<1x4xf32> -> vector<1x4xf32>
    %47 = vector.broadcast %46 : vector<1x4xf32> to vector<24x4xf32>
    %48 = arith.mulf %43, %47 : vector<24x4xf32>
    %49 = arith.truncf %48 : vector<24x4xf32> to vector<24x4xbf16>
    %cst_25 = arith.constant dense<0.000000e+00> : vector<24x32xf32>
    %50 = tpu.matmul %49, %28, %cst_25 {dimension_numbers = #tpu.dot_dimension_numbers<[1], [0], [0], [1], [0, 0, 1, 1], [], []>} : vector<24x4xbf16>, vector<4x32xbf16>, vector<24x32xf32> -> vector<24x32xf32>
    %51 = arith.mulf %50, %31 : vector<24x32xf32>
    %cst_26 = arith.constant dense<0.000000e+00> : vector<32xf32>
    %52 = vector.multi_reduction <add>, %51, %cst_26 [0] : vector<24x32xf32> to vector<32xf32>
    %53 = vector.shape_cast %52 : vector<32xf32> to vector<1x32xf32>
    %54 = vector.extract_strided_slice %5 {offsets = [24, 0], sizes = [24, 32], strides = [1, 1]} : vector<192x32xf32> to vector<24x32xf32>
    %55 = vector.extract_strided_slice %10 {offsets = [24, 0], sizes = [24, 32], strides = [1, 1]} : vector<192x32xf32> to vector<24x32xf32>
    %56 = vector.extract_strided_slice %26 {offsets = [1, 0], sizes = [1, 32], strides = [1, 1]} : vector<8x32xf32> to vector<1x32xf32>
    %57 = vector.broadcast %56 : vector<1x32xf32> to vector<24x32xf32>
    %58 = arith.mulf %54, %57 : vector<24x32xf32>
    %59 = arith.truncf %58 : vector<24x32xf32> to vector<24x32xbf16>
    %cst_27 = arith.constant dense<0.000000e+00> : vector<24x4xf32>
    %60 = tpu.matmul %59, %27, %cst_27 {dimension_numbers = #tpu.dot_dimension_numbers<[1], [0], [0], [1], [0, 0, 1, 1], [], []>} : vector<24x32xbf16>, vector<32x4xbf16>, vector<24x4xf32> -> vector<24x4xf32>
    %61 = vector.broadcast %29 : vector<24x1xf32> to vector<24x4xf32>
    %62 = arith.addf %60, %61 : vector<24x4xf32>
    %cst_28 = arith.constant dense<0xFF800000> : vector<4xf32>
    %63 = vector.multi_reduction <maximumf>, %62, %cst_28 [0] : vector<24x4xf32> to vector<4xf32>
    %64 = vector.shape_cast %63 : vector<4xf32> to vector<1x4xf32>
    %65 = vector.broadcast %64 : vector<1x4xf32> to vector<24x4xf32>
    %66 = arith.subf %62, %65 : vector<24x4xf32>
    %67 = math.exp %66 : vector<24x4xf32>
    %cst_29 = arith.constant dense<0.000000e+00> : vector<4xf32>
    %68 = vector.multi_reduction <add>, %67, %cst_29 [0] : vector<24x4xf32> to vector<4xf32>
    %69 = vector.shape_cast %68 : vector<4xf32> to vector<1x4xf32>
    %70 = tpu.reciprocal %69 {approx = true} : vector<1x4xf32> -> vector<1x4xf32>
    %71 = vector.broadcast %70 : vector<1x4xf32> to vector<24x4xf32>
    %72 = arith.mulf %67, %71 : vector<24x4xf32>
    %73 = arith.truncf %72 : vector<24x4xf32> to vector<24x4xbf16>
    %cst_30 = arith.constant dense<0.000000e+00> : vector<24x32xf32>
    %74 = tpu.matmul %73, %28, %cst_30 {dimension_numbers = #tpu.dot_dimension_numbers<[1], [0], [0], [1], [0, 0, 1, 1], [], []>} : vector<24x4xbf16>, vector<4x32xbf16>, vector<24x32xf32> -> vector<24x32xf32>
    %75 = arith.mulf %74, %55 : vector<24x32xf32>
    %cst_31 = arith.constant dense<0.000000e+00> : vector<32xf32>
    %76 = vector.multi_reduction <add>, %75, %cst_31 [0] : vector<24x32xf32> to vector<32xf32>
    %77 = vector.shape_cast %76 : vector<32xf32> to vector<1x32xf32>
    %78 = vector.extract_strided_slice %5 {offsets = [48, 0], sizes = [24, 32], strides = [1, 1]} : vector<192x32xf32> to vector<24x32xf32>
    %79 = vector.extract_strided_slice %10 {offsets = [48, 0], sizes = [24, 32], strides = [1, 1]} : vector<192x32xf32> to vector<24x32xf32>
    %80 = vector.extract_strided_slice %26 {offsets = [2, 0], sizes = [1, 32], strides = [1, 1]} : vector<8x32xf32> to vector<1x32xf32>
    %81 = vector.broadcast %80 : vector<1x32xf32> to vector<24x32xf32>
    %82 = arith.mulf %78, %81 : vector<24x32xf32>
    %83 = arith.truncf %82 : vector<24x32xf32> to vector<24x32xbf16>
    %cst_32 = arith.constant dense<0.000000e+00> : vector<24x4xf32>
    %84 = tpu.matmul %83, %27, %cst_32 {dimension_numbers = #tpu.dot_dimension_numbers<[1], [0], [0], [1], [0, 0, 1, 1], [], []>} : vector<24x32xbf16>, vector<32x4xbf16>, vector<24x4xf32> -> vector<24x4xf32>
    %85 = vector.broadcast %29 : vector<24x1xf32> to vector<24x4xf32>
    %86 = arith.addf %84, %85 : vector<24x4xf32>
    %cst_33 = arith.constant dense<0xFF800000> : vector<4xf32>
    %87 = vector.multi_reduction <maximumf>, %86, %cst_33 [0] : vector<24x4xf32> to vector<4xf32>
    %88 = vector.shape_cast %87 : vector<4xf32> to vector<1x4xf32>
    %89 = vector.broadcast %88 : vector<1x4xf32> to vector<24x4xf32>
    %90 = arith.subf %86, %89 : vector<24x4xf32>
    %91 = math.exp %90 : vector<24x4xf32>
    %cst_34 = arith.constant dense<0.000000e+00> : vector<4xf32>
    %92 = vector.multi_reduction <add>, %91, %cst_34 [0] : vector<24x4xf32> to vector<4xf32>
    %93 = vector.shape_cast %92 : vector<4xf32> to vector<1x4xf32>
    %94 = tpu.reciprocal %93 {approx = true} : vector<1x4xf32> -> vector<1x4xf32>
    %95 = vector.broadcast %94 : vector<1x4xf32> to vector<24x4xf32>
    %96 = arith.mulf %91, %95 : vector<24x4xf32>
    %97 = arith.truncf %96 : vector<24x4xf32> to vector<24x4xbf16>
    %cst_35 = arith.constant dense<0.000000e+00> : vector<24x32xf32>
    %98 = tpu.matmul %97, %28, %cst_35 {dimension_numbers = #tpu.dot_dimension_numbers<[1], [0], [0], [1], [0, 0, 1, 1], [], []>} : vector<24x4xbf16>, vector<4x32xbf16>, vector<24x32xf32> -> vector<24x32xf32>
    %99 = arith.mulf %98, %79 : vector<24x32xf32>
    %cst_36 = arith.constant dense<0.000000e+00> : vector<32xf32>
    %100 = vector.multi_reduction <add>, %99, %cst_36 [0] : vector<24x32xf32> to vector<32xf32>
    %101 = vector.shape_cast %100 : vector<32xf32> to vector<1x32xf32>
    %102 = vector.extract_strided_slice %5 {offsets = [72, 0], sizes = [24, 32], strides = [1, 1]} : vector<192x32xf32> to vector<24x32xf32>
    %103 = vector.extract_strided_slice %10 {offsets = [72, 0], sizes = [24, 32], strides = [1, 1]} : vector<192x32xf32> to vector<24x32xf32>
    %104 = vector.extract_strided_slice %26 {offsets = [3, 0], sizes = [1, 32], strides = [1, 1]} : vector<8x32xf32> to vector<1x32xf32>
    %105 = vector.broadcast %104 : vector<1x32xf32> to vector<24x32xf32>
    %106 = arith.mulf %102, %105 : vector<24x32xf32>
    %107 = arith.truncf %106 : vector<24x32xf32> to vector<24x32xbf16>
    %cst_37 = arith.constant dense<0.000000e+00> : vector<24x4xf32>
    %108 = tpu.matmul %107, %27, %cst_37 {dimension_numbers = #tpu.dot_dimension_numbers<[1], [0], [0], [1], [0, 0, 1, 1], [], []>} : vector<24x32xbf16>, vector<32x4xbf16>, vector<24x4xf32> -> vector<24x4xf32>
    %109 = vector.broadcast %29 : vector<24x1xf32> to vector<24x4xf32>
    %110 = arith.addf %108, %109 : vector<24x4xf32>
    %cst_38 = arith.constant dense<0xFF800000> : vector<4xf32>
    %111 = vector.multi_reduction <maximumf>, %110, %cst_38 [0] : vector<24x4xf32> to vector<4xf32>
    %112 = vector.shape_cast %111 : vector<4xf32> to vector<1x4xf32>
    %113 = vector.broadcast %112 : vector<1x4xf32> to vector<24x4xf32>
    %114 = arith.subf %110, %113 : vector<24x4xf32>
    %115 = math.exp %114 : vector<24x4xf32>
    %cst_39 = arith.constant dense<0.000000e+00> : vector<4xf32>
    %116 = vector.multi_reduction <add>, %115, %cst_39 [0] : vector<24x4xf32> to vector<4xf32>
    %117 = vector.shape_cast %116 : vector<4xf32> to vector<1x4xf32>
    %118 = tpu.reciprocal %117 {approx = true} : vector<1x4xf32> -> vector<1x4xf32>
    %119 = vector.broadcast %118 : vector<1x4xf32> to vector<24x4xf32>
    %120 = arith.mulf %115, %119 : vector<24x4xf32>
    %121 = arith.truncf %120 : vector<24x4xf32> to vector<24x4xbf16>
    %cst_40 = arith.constant dense<0.000000e+00> : vector<24x32xf32>
    %122 = tpu.matmul %121, %28, %cst_40 {dimension_numbers = #tpu.dot_dimension_numbers<[1], [0], [0], [1], [0, 0, 1, 1], [], []>} : vector<24x4xbf16>, vector<4x32xbf16>, vector<24x32xf32> -> vector<24x32xf32>
    %123 = arith.mulf %122, %103 : vector<24x32xf32>
    %cst_41 = arith.constant dense<0.000000e+00> : vector<32xf32>
    %124 = vector.multi_reduction <add>, %123, %cst_41 [0] : vector<24x32xf32> to vector<32xf32>
    %125 = vector.shape_cast %124 : vector<32xf32> to vector<1x32xf32>
    %126 = vector.extract_strided_slice %5 {offsets = [96, 0], sizes = [24, 32], strides = [1, 1]} : vector<192x32xf32> to vector<24x32xf32>
    %127 = vector.extract_strided_slice %10 {offsets = [96, 0], sizes = [24, 32], strides = [1, 1]} : vector<192x32xf32> to vector<24x32xf32>
    %128 = vector.extract_strided_slice %26 {offsets = [4, 0], sizes = [1, 32], strides = [1, 1]} : vector<8x32xf32> to vector<1x32xf32>
    %129 = vector.broadcast %128 : vector<1x32xf32> to vector<24x32xf32>
    %130 = arith.mulf %126, %129 : vector<24x32xf32>
    %131 = arith.truncf %130 : vector<24x32xf32> to vector<24x32xbf16>
    %cst_42 = arith.constant dense<0.000000e+00> : vector<24x4xf32>
    %132 = tpu.matmul %131, %27, %cst_42 {dimension_numbers = #tpu.dot_dimension_numbers<[1], [0], [0], [1], [0, 0, 1, 1], [], []>} : vector<24x32xbf16>, vector<32x4xbf16>, vector<24x4xf32> -> vector<24x4xf32>
    %133 = vector.broadcast %29 : vector<24x1xf32> to vector<24x4xf32>
    %134 = arith.addf %132, %133 : vector<24x4xf32>
    %cst_43 = arith.constant dense<0xFF800000> : vector<4xf32>
    %135 = vector.multi_reduction <maximumf>, %134, %cst_43 [0] : vector<24x4xf32> to vector<4xf32>
    %136 = vector.shape_cast %135 : vector<4xf32> to vector<1x4xf32>
    %137 = vector.broadcast %136 : vector<1x4xf32> to vector<24x4xf32>
    %138 = arith.subf %134, %137 : vector<24x4xf32>
    %139 = math.exp %138 : vector<24x4xf32>
    %cst_44 = arith.constant dense<0.000000e+00> : vector<4xf32>
    %140 = vector.multi_reduction <add>, %139, %cst_44 [0] : vector<24x4xf32> to vector<4xf32>
    %141 = vector.shape_cast %140 : vector<4xf32> to vector<1x4xf32>
    %142 = tpu.reciprocal %141 {approx = true} : vector<1x4xf32> -> vector<1x4xf32>
    %143 = vector.broadcast %142 : vector<1x4xf32> to vector<24x4xf32>
    %144 = arith.mulf %139, %143 : vector<24x4xf32>
    %145 = arith.truncf %144 : vector<24x4xf32> to vector<24x4xbf16>
    %cst_45 = arith.constant dense<0.000000e+00> : vector<24x32xf32>
    %146 = tpu.matmul %145, %28, %cst_45 {dimension_numbers = #tpu.dot_dimension_numbers<[1], [0], [0], [1], [0, 0, 1, 1], [], []>} : vector<24x4xbf16>, vector<4x32xbf16>, vector<24x32xf32> -> vector<24x32xf32>
    %147 = arith.mulf %146, %127 : vector<24x32xf32>
    %cst_46 = arith.constant dense<0.000000e+00> : vector<32xf32>
    %148 = vector.multi_reduction <add>, %147, %cst_46 [0] : vector<24x32xf32> to vector<32xf32>
    %149 = vector.shape_cast %148 : vector<32xf32> to vector<1x32xf32>
    %150 = vector.extract_strided_slice %5 {offsets = [120, 0], sizes = [24, 32], strides = [1, 1]} : vector<192x32xf32> to vector<24x32xf32>
    %151 = vector.extract_strided_slice %10 {offsets = [120, 0], sizes = [24, 32], strides = [1, 1]} : vector<192x32xf32> to vector<24x32xf32>
    %152 = vector.extract_strided_slice %26 {offsets = [5, 0], sizes = [1, 32], strides = [1, 1]} : vector<8x32xf32> to vector<1x32xf32>
    %153 = vector.broadcast %152 : vector<1x32xf32> to vector<24x32xf32>
    %154 = arith.mulf %150, %153 : vector<24x32xf32>
    %155 = arith.truncf %154 : vector<24x32xf32> to vector<24x32xbf16>
    %cst_47 = arith.constant dense<0.000000e+00> : vector<24x4xf32>
    %156 = tpu.matmul %155, %27, %cst_47 {dimension_numbers = #tpu.dot_dimension_numbers<[1], [0], [0], [1], [0, 0, 1, 1], [], []>} : vector<24x32xbf16>, vector<32x4xbf16>, vector<24x4xf32> -> vector<24x4xf32>
    %157 = vector.broadcast %29 : vector<24x1xf32> to vector<24x4xf32>
    %158 = arith.addf %156, %157 : vector<24x4xf32>
    %cst_48 = arith.constant dense<0xFF800000> : vector<4xf32>
    %159 = vector.multi_reduction <maximumf>, %158, %cst_48 [0] : vector<24x4xf32> to vector<4xf32>
    %160 = vector.shape_cast %159 : vector<4xf32> to vector<1x4xf32>
    %161 = vector.broadcast %160 : vector<1x4xf32> to vector<24x4xf32>
    %162 = arith.subf %158, %161 : vector<24x4xf32>
    %163 = math.exp %162 : vector<24x4xf32>
    %cst_49 = arith.constant dense<0.000000e+00> : vector<4xf32>
    %164 = vector.multi_reduction <add>, %163, %cst_49 [0] : vector<24x4xf32> to vector<4xf32>
    %165 = vector.shape_cast %164 : vector<4xf32> to vector<1x4xf32>
    %166 = tpu.reciprocal %165 {approx = true} : vector<1x4xf32> -> vector<1x4xf32>
    %167 = vector.broadcast %166 : vector<1x4xf32> to vector<24x4xf32>
    %168 = arith.mulf %163, %167 : vector<24x4xf32>
    %169 = arith.truncf %168 : vector<24x4xf32> to vector<24x4xbf16>
    %cst_50 = arith.constant dense<0.000000e+00> : vector<24x32xf32>
    %170 = tpu.matmul %169, %28, %cst_50 {dimension_numbers = #tpu.dot_dimension_numbers<[1], [0], [0], [1], [0, 0, 1, 1], [], []>} : vector<24x4xbf16>, vector<4x32xbf16>, vector<24x32xf32> -> vector<24x32xf32>
    %171 = arith.mulf %170, %151 : vector<24x32xf32>
    %cst_51 = arith.constant dense<0.000000e+00> : vector<32xf32>
    %172 = vector.multi_reduction <add>, %171, %cst_51 [0] : vector<24x32xf32> to vector<32xf32>
    %173 = vector.shape_cast %172 : vector<32xf32> to vector<1x32xf32>
    %174 = vector.extract_strided_slice %5 {offsets = [144, 0], sizes = [24, 32], strides = [1, 1]} : vector<192x32xf32> to vector<24x32xf32>
    %175 = vector.extract_strided_slice %10 {offsets = [144, 0], sizes = [24, 32], strides = [1, 1]} : vector<192x32xf32> to vector<24x32xf32>
    %176 = vector.extract_strided_slice %26 {offsets = [6, 0], sizes = [1, 32], strides = [1, 1]} : vector<8x32xf32> to vector<1x32xf32>
    %177 = vector.broadcast %176 : vector<1x32xf32> to vector<24x32xf32>
    %178 = arith.mulf %174, %177 : vector<24x32xf32>
    %179 = arith.truncf %178 : vector<24x32xf32> to vector<24x32xbf16>
    %cst_52 = arith.constant dense<0.000000e+00> : vector<24x4xf32>
    %180 = tpu.matmul %179, %27, %cst_52 {dimension_numbers = #tpu.dot_dimension_numbers<[1], [0], [0], [1], [0, 0, 1, 1], [], []>} : vector<24x32xbf16>, vector<32x4xbf16>, vector<24x4xf32> -> vector<24x4xf32>
    %181 = vector.broadcast %29 : vector<24x1xf32> to vector<24x4xf32>
    %182 = arith.addf %180, %181 : vector<24x4xf32>
    %cst_53 = arith.constant dense<0xFF800000> : vector<4xf32>
    %183 = vector.multi_reduction <maximumf>, %182, %cst_53 [0] : vector<24x4xf32> to vector<4xf32>
    %184 = vector.shape_cast %183 : vector<4xf32> to vector<1x4xf32>
    %185 = vector.broadcast %184 : vector<1x4xf32> to vector<24x4xf32>
    %186 = arith.subf %182, %185 : vector<24x4xf32>
    %187 = math.exp %186 : vector<24x4xf32>
    %cst_54 = arith.constant dense<0.000000e+00> : vector<4xf32>
    %188 = vector.multi_reduction <add>, %187, %cst_54 [0] : vector<24x4xf32> to vector<4xf32>
    %189 = vector.shape_cast %188 : vector<4xf32> to vector<1x4xf32>
    %190 = tpu.reciprocal %189 {approx = true} : vector<1x4xf32> -> vector<1x4xf32>
    %191 = vector.broadcast %190 : vector<1x4xf32> to vector<24x4xf32>
    %192 = arith.mulf %187, %191 : vector<24x4xf32>
    %193 = arith.truncf %192 : vector<24x4xf32> to vector<24x4xbf16>
    %cst_55 = arith.constant dense<0.000000e+00> : vector<24x32xf32>
    %194 = tpu.matmul %193, %28, %cst_55 {dimension_numbers = #tpu.dot_dimension_numbers<[1], [0], [0], [1], [0, 0, 1, 1], [], []>} : vector<24x4xbf16>, vector<4x32xbf16>, vector<24x32xf32> -> vector<24x32xf32>
    %195 = arith.mulf %194, %175 : vector<24x32xf32>
    %cst_56 = arith.constant dense<0.000000e+00> : vector<32xf32>
    %196 = vector.multi_reduction <add>, %195, %cst_56 [0] : vector<24x32xf32> to vector<32xf32>
    %197 = vector.shape_cast %196 : vector<32xf32> to vector<1x32xf32>
    %198 = vector.extract_strided_slice %5 {offsets = [168, 0], sizes = [24, 32], strides = [1, 1]} : vector<192x32xf32> to vector<24x32xf32>
    %199 = vector.extract_strided_slice %10 {offsets = [168, 0], sizes = [24, 32], strides = [1, 1]} : vector<192x32xf32> to vector<24x32xf32>
    %200 = vector.extract_strided_slice %26 {offsets = [7, 0], sizes = [1, 32], strides = [1, 1]} : vector<8x32xf32> to vector<1x32xf32>
    %201 = vector.broadcast %200 : vector<1x32xf32> to vector<24x32xf32>
    %202 = arith.mulf %198, %201 : vector<24x32xf32>
    %203 = arith.truncf %202 : vector<24x32xf32> to vector<24x32xbf16>
    %cst_57 = arith.constant dense<0.000000e+00> : vector<24x4xf32>
    %204 = tpu.matmul %203, %27, %cst_57 {dimension_numbers = #tpu.dot_dimension_numbers<[1], [0], [0], [1], [0, 0, 1, 1], [], []>} : vector<24x32xbf16>, vector<32x4xbf16>, vector<24x4xf32> -> vector<24x4xf32>
    %205 = vector.broadcast %29 : vector<24x1xf32> to vector<24x4xf32>
    %206 = arith.addf %204, %205 : vector<24x4xf32>
    %cst_58 = arith.constant dense<0xFF800000> : vector<4xf32>
    %207 = vector.multi_reduction <maximumf>, %206, %cst_58 [0] : vector<24x4xf32> to vector<4xf32>
    %208 = vector.shape_cast %207 : vector<4xf32> to vector<1x4xf32>
    %209 = vector.broadcast %208 : vector<1x4xf32> to vector<24x4xf32>
    %210 = arith.subf %206, %209 : vector<24x4xf32>
    %211 = math.exp %210 : vector<24x4xf32>
    %cst_59 = arith.constant dense<0.000000e+00> : vector<4xf32>
    %212 = vector.multi_reduction <add>, %211, %cst_59 [0] : vector<24x4xf32> to vector<4xf32>
    %213 = vector.shape_cast %212 : vector<4xf32> to vector<1x4xf32>
    %214 = tpu.reciprocal %213 {approx = true} : vector<1x4xf32> -> vector<1x4xf32>
    %215 = vector.broadcast %214 : vector<1x4xf32> to vector<24x4xf32>
    %216 = arith.mulf %211, %215 : vector<24x4xf32>
    %217 = arith.truncf %216 : vector<24x4xf32> to vector<24x4xbf16>
    %cst_60 = arith.constant dense<0.000000e+00> : vector<24x32xf32>
    %218 = tpu.matmul %217, %28, %cst_60 {dimension_numbers = #tpu.dot_dimension_numbers<[1], [0], [0], [1], [0, 0, 1, 1], [], []>} : vector<24x4xbf16>, vector<4x32xbf16>, vector<24x32xf32> -> vector<24x32xf32>
    %219 = arith.mulf %218, %199 : vector<24x32xf32>
    %cst_61 = arith.constant dense<0.000000e+00> : vector<32xf32>
    %220 = vector.multi_reduction <add>, %219, %cst_61 [0] : vector<24x32xf32> to vector<32xf32>
    %221 = vector.shape_cast %220 : vector<32xf32> to vector<1x32xf32>
    %222 = tpu.concatenate %53, %77, %101, %125, %149, %173, %197, %221 in 0 : vector<1x32xf32>, vector<1x32xf32>, vector<1x32xf32>, vector<1x32xf32>, vector<1x32xf32>, vector<1x32xf32>, vector<1x32xf32>, vector<1x32xf32> -> vector<8x32xf32>
    %223 = arith.truncf %222 : vector<8x32xf32> to vector<8x32xbf16>
    %c0_62 = arith.constant 0 : index
    %c0_63 = arith.constant 0 : index
    %224 = vector.load %arg5[%c0_62, %c0_63] : memref<32x128xbf16, #tpu.memory_space<vmem>>, vector<32x128xbf16>
    %cst_64 = arith.constant dense<0.000000e+00> : vector<8x128xf32>
    %225 = tpu.matmul %223, %224, %cst_64 {dimension_numbers = #tpu.dot_dimension_numbers<[1], [0], [0], [1], [0, 0, 1, 1], [], []>} : vector<8x32xbf16>, vector<32x128xbf16>, vector<8x128xf32> -> vector<8x128xf32>
    %c0_65 = arith.constant 0 : index
    %c0_66 = arith.constant 0 : index
    %226 = vector.load %arg9[%c0_65, %c0_66] : memref<1x128xf32, #tpu.memory_space<vmem>>, vector<1x128xf32>
    %227 = vector.broadcast %226 : vector<1x128xf32> to vector<8x128xf32>
    %228 = arith.addf %225, %227 : vector<8x128xf32>
    %c0_67 = arith.constant 0 : index
    %c0_68 = arith.constant 0 : index
    %c0_69 = arith.constant 0 : index
    %229 = vector.load %arg13[%c0_67, %c0_68, %c0_69] : memref<1x8x128xf32, #tpu.memory_space<vmem>>, vector<1x8x128xf32>
    %230 = vector.shape_cast %229 : vector<1x8x128xf32> to vector<8x128xf32>
    %231 = vector.shape_cast %228 : vector<8x128xf32> to vector<1x8x128xf32>
    tpu.vector_store %arg13[%c0_67, %c0_68, %c0_69], %231 {strides = array<i32>} : memref<1x8x128xf32, #tpu.memory_space<vmem>>, vector<1x8x128xf32>,
    return
  }
  func.func @transform_0(%arg0: i32) -> (i32, i32) {
    %c0_i32 = arith.constant 0 : i32
    %c0_i32_0 = arith.constant 0 : i32
    return %arg0, %c0_i32 : i32, i32
  }
  func.func @transform_1(%arg0: i32) -> (i32, i32) {
    %c0_i32 = arith.constant 0 : i32
    %c0_i32_0 = arith.constant 0 : i32
    %c0_i32_1 = arith.constant 0 : i32
    return %c0_i32, %c0_i32_0 : i32, i32
  }
  func.func @transform_2(%arg0: i32) -> (i32, i32) {
    %c0_i32 = arith.constant 0 : i32
    %c0_i32_0 = arith.constant 0 : i32
    %c0_i32_1 = arith.constant 0 : i32
    return %c0_i32, %c0_i32_0 : i32, i32
  }
  func.func @transform_3(%arg0: i32) -> (i32, i32) {
    %c0_i32 = arith.constant 0 : i32
    %c0_i32_0 = arith.constant 0 : i32
    %c0_i32_1 = arith.constant 0 : i32
    return %c0_i32, %c0_i32_0 : i32, i32
  }
  func.func @transform_4(%arg0: i32) -> (i32, i32) {
    %c0_i32 = arith.constant 0 : i32
    %c0_i32_0 = arith.constant 0 : i32
    %c0_i32_1 = arith.constant 0 : i32
    return %c0_i32, %c0_i32_0 : i32, i32
  }
  func.func @transform_5(%arg0: i32) -> (i32, i32) {
    %c0_i32 = arith.constant 0 : i32
    %c0_i32_0 = arith.constant 0 : i32
    %c0_i32_1 = arith.constant 0 : i32
    return %c0_i32, %c0_i32_0 : i32, i32
  }
  func.func @transform_6(%arg0: i32) -> (i32, i32) {
    %c0_i32 = arith.constant 0 : i32
    %c0_i32_0 = arith.constant 0 : i32
    %c0_i32_1 = arith.constant 0 : i32
    return %c0_i32, %c0_i32_0 : i32, i32
  }
  func.func @transform_7(%arg0: i32) -> (i32, i32) {
    %c0_i32 = arith.constant 0 : i32
    %c0_i32_0 = arith.constant 0 : i32
    %c0_i32_1 = arith.constant 0 : i32
    return %c0_i32, %c0_i32_0 : i32, i32
  }
  func.func @transform_8(%arg0: i32) -> (i32, i32) {
    %c0_i32 = arith.constant 0 : i32
    %c0_i32_0 = arith.constant 0 : i32
    %c0_i32_1 = arith.constant 0 : i32
    return %c0_i32, %c0_i32_0 : i32, i32
  }
  func.func @transform_9(%arg0: i32) -> (i32, i32) {
    %c0_i32 = arith.constant 0 : i32
    %c0_i32_0 = arith.constant 0 : i32
    %c0_i32_1 = arith.constant 0 : i32
    return %c0_i32, %c0_i32_0 : i32, i32
  }
  func.func @transform_10(%arg0: i32) -> (i32, i32) {
    %c0_i32 = arith.constant 0 : i32
    %c0_i32_0 = arith.constant 0 : i32
    %c0_i32_1 = arith.constant 0 : i32
    return %c0_i32, %c0_i32_0 : i32, i32
  }
  func.func @transform_11(%arg0: i32) -> (i32, i32) {
    %c0_i32 = arith.constant 0 : i32
    %c0_i32_0 = arith.constant 0 : i32
    %c0_i32_1 = arith.constant 0 : i32
    return %c0_i32, %c0_i32_0 : i32, i32
  }
  func.func @transform_12(%arg0: i32) -> (i32, i32, i32) {
    %c0_i32 = arith.constant 0 : i32
    %c0_i32_0 = arith.constant 0 : i32
    %c0_i32_1 = arith.constant 0 : i32
    return %arg0, %c0_i32, %c0_i32_0 : i32, i32, i32
  }
}

</mosaic_0001>

<bundles_post_ra>
// kernel: tpu_custom_call.1
= control target key start
LH: loop header
LB: loop body
LE: loop exit
PB: predicated region body
PF: predicated region fallthrough
CT: control target
= control target key end

     0   :  { %s3952_s0 = inlined_call_operand.vmem [shape: bf16[384,32], index: 0, kind: input, shape index: {}]   ;;  %s3953_s1 = inlined_call_operand.vmem [shape: bf16[32,32], index: 1, kind: input, shape index: {}]   ;;  %s3954_s2 = inlined_call_operand.vmem [shape: bf16[32,32], index: 2, kind: input, shape index: {}]   ;;  %s3955_s3 = inlined_call_operand.vmem [shape: bf16[32,32], index: 3, kind: input, shape index: {}]   ;;  %s3956_s4 = inlined_call_operand.vmem [shape: bf16[32,128], index: 4, kind: input, shape index: {}]   ;;  %s3957_s5 = inlined_call_operand.vmem [shape: f32[1,32], index: 5, kind: input, shape index: {}]   ;;  %s3958_s6 = inlined_call_operand.vmem [shape: f32[1,32], index: 6, kind: input, shape index: {}]   ;;  %s3959_s7 = inlined_call_operand.vmem [shape: f32[1,32], index: 7, kind: input, shape index: {}]   ;;  %s3960_s8 = inlined_call_operand.vmem [shape: f32[1,128], index: 8, kind: input, shape index: {}]   ;;  %s3961_s9 = inlined_call_operand.vmem [shape: bf16[32,4], index: 9, kind: input, shape index: {}]   ;;  %s3962_s10 = inlined_call_operand.vmem [shape: bf16[4,32], index: 10, kind: input, shape index: {}]   ;;  %s3963_s11 = inlined_call_operand.vmem [shape: f32[24,1], index: 11, kind: input, shape index: {}]   ;;  %s3964_s12 = inlined_call_operand.hbm [shape: f32[2,8,128], index: 12, kind: output, shape index: {}]  }
   0x1   :  { %3966 = sst [smem:[#allocation9_spill]] %s3952_s0 }
   0x2   :  { %3967 = sst [smem:[#allocation10_spill]] %s3953_s1 }
   0x3   :  { %17 = vsyncpa [#allocation3], 0 }
   0x4   :  { %19 = vsyncpa [#allocation3 + $0x1], 0  ;;  %s3153_s21 = smov 0   ;;  %s3155_s22 = smov 0  }
   0x5   :  { %s3157_s23 = smov 0   ;;  %s3159_s24 = smov 0  }
   0x6 LB: > { %s3174_s25 = sadd.s32 4294967295, %s3082_s24   ;;  %s2502_s26 = sadd.s32 4294967294, %s3082_s24   ;;  %s3082_s24 = sphi %s3159_s24, %s3986_s24   ;;  %s3078_s23 = sphi %s3157_s23, %s3985_s23   ;;  %s3074_s22 = sphi %s3155_s22, %s3984_s22   ;;  %s3070_s21 = sphi %s3153_s21, %s3983_s21  }
   0x7   : > { %s3178_s27 = sadd.s32 1, %s3082_s24   ;;  %s289_s28 = sadd.s32 1, %s3078_s23 }
   0x8   : > { %s286_s29 = ssub.s32 %s3082_s24, %s3178_s27  ;;  %p299_p0 = scmp.ne.s32.totalorder %s3078_s23, %s3074_s22 }
   0x9   : > { %p287_p1 = scmp.eq.s32.totalorder %s286_s29, 0  ;;  %p300_p2 = scmp.eq.s32.totalorder %s3174_s25, 1 }
   0xa   : > { %p305_p3 = scmp.ne.s32.totalorder %s3074_s22, %s3070_s21  ;;  %p306_p4 = scmp.eq.s32.totalorder %s2502_s26, 1 }
   0xb   : > { %s3189_s30 = scalar_select %p287_p1, %s3078_s23, %s289_s28  }
   0xc   : > { %p3191_p5 = por %p300_p2, %p299_p0  ;;  %p3195_p6 = por %p306_p4, %p305_p3 }
   0xd   : > { %p2505_p7 = scmp.ge.s32.totalorder %s3082_s24, 1  ;;  %p366_p8 = scmp.lt.s32.totalorder %s3082_s24, 3 }
   0xf   : > { %p367_p9 = pnand %p2505_p7, %p366_p8 }
  0x11   : > { %370 = sbr.rel (%p367_p9) target bundleno = 1050 (0x41a), region = 68 }
  0x16   : > { %v2929_v0 = vld [vmem:[%s3954_s2 + $0x8] sm:$0xff]   ;;  %s408_s17 = smul.u32 24, %s3174_s25  ;;  %v2930_v1 = vld [vmem:[%s3954_s2] sm:$0xff]   ;;  %s3970_s0 = sld [smem:[#allocation9_spill]]  ;;  %vm522_vm0 = vcmask 261120   ;;  %v3965_v6 = vmov 0.0  }
  0x17   : > { %2693 = vmatprep.subr.bf16.mxu0 %v2929_v0  ;;  %v2952_v2 = vld [vmem:[%s3955_s3 + $0x8] sm:$0xff]   ;;  %s3971_s1 = sld [smem:[#allocation10_spill]]  ;;  %vm869_vm1 = vcmask 1040384   ;;  %vm870_vm2 = vsmask.f32 256  ;;  %vm878_vm4 = vcmask 1041408  }
  0x18   : > { %p409_p10 = scmp.lt.s32.totalorder %s408_s17, 47  ;;  %2694 = vmatpush3.bf16.msra.mxu0 %v2929_v0  ;;  %2721 = vmatprep.subr.bf16.mxu1 %v2952_v2  ;;  %vm3271_vm3 = vmand %vm869_vm1, %vm870_vm2  ;;  %vm879_vm5 = vsmask.f32 1280  ;;  %vm887_vm7 = vcmask 1042432   ;;  %vm888_vm8 = vsmask.f32 2304 }
  0x19   : > { %2695 = vmatprep.subr.bf16.mxu0 %v2930_v1  ;;  %2722 = vmatpush3.bf16.msra.mxu1 %v2952_v2  ;;  %vm880_vm6 = vmand %vm878_vm4, %vm879_vm5  ;;  %vm896_vm10 = vcmask 1043456   ;;  %vm897_vm11 = vsmask.f32 3328  ;;  %vm3085_vm12 = vmmov 0   ;;  %v2953_v59 = vld [vmem:[%s3955_s3] sm:$0xff]   ;;  %v3308_v60 = vld [vmem:[%s3961_s9 + $0x8] sm:$0xff]  }
  0x1a   : > { %s3988_s17 = smov (!%p409_p10, %s408_s17), 47  ;;  %vm889_vm9 = vmand %vm887_vm7, %vm888_vm8  ;;  %2723 = vmatprep.subr.bf16.mxu1 %v2953_v59  ;;  %v3326_v61 = vld [vmem:[%s3961_s9] sm:$0xff]   ;;  %v974_v63 = vld [vmem:[%s3963_s11 + $0x10] sm:$0xff]  ;;  %v3086_v0 = vmov 0   ;;  %vm1065_vm14 = vcmask 31744   ;;  %vm2355_vm15 = vcmask 1044480  }
  0x1b   : > { %s2507_s20 = sshll.u32 %s3988_s17, 2  ;;  %vm898_vm13 = vmand %vm896_vm10, %vm897_vm11  ;;  %v972_v62 = vld [vmem:[%s3963_s11] sm:$0xff]  ;;  %2927 = vset.pattern.permute.xlu0 %v3086_v0  ;;  %2928 = vset.pattern.permute.xlu1 %v3086_v0  ;;  %vm2359_vm2 = vcmask 1046528   ;;  %s405_s18 = sand.u32 1, %s3074_s22  }
  0x1c   : > { %2696 = vmatpush3.bf16.msra.mxu0 %v2930_v1  ;;  %s3214_s16 = scalar_lea.vmem %s3970_s0, %s2507_s20  ;;  %986 = vperm.xlu0 %2927, %v972_v62   ;;  %v973_v1 = vld [vmem:[%s3963_s11 + $0x8] sm:$0xff]  ;;  %v3379_v31 = vld [vmem:[%s3958_s6] ss:$0 sm:$0xff]  ;;  %s2506_s19 = sshll.u32 %s405_s18, 3 }
  0x1d   : > { %v3217_v3 = vld [vmem:[%s3214_s16] sm:$0xf]  ;;  %v416_v4 = vld [vmem:[%s3214_s16 + $0x4] sm:$0xf]  ;;  %v418_v5 = vld [vmem:[%s3214_s16 + $0xc] sm:$0xf]  ;;  %2749 = vmatprep.subr.bf16.mxu0 %v3965_v6  ;;  %2724 = vmatpush3.bf16.msra.mxu1 %v2953_v59 }
  0x1e   : > { %v2509_v7 = vcombine.low %v3217_v3, %v416_v4  ;;  %v417_v8 = vld [vmem:[%s3214_s16 + $0x8] sm:$0xf]  ;;  %v3230_v11 = vld [vmem:[%s3214_s16 + $0x10] sm:$0xff]   ;;  %v421_v12 = vld [vmem:[%s3214_s16 + $0x18] sm:$0xf]  ;;  %v2550_v25 = vcombine.low %v418_v5, %v418_v5  ;;  %2757 = vmatprep.subr.bf16.mxu1 %v3308_v60  ;;  %996 = vperm.xlu1 %2928, %v974_v63   ;;  %s2600_s28 = sshll.u32 %s3174_s25, 7 }
  0x1f   : > { %v2935_v9 = vld [vmem:[%s3971_s1 + $0x8] sm:$0xff]   ;;  %v3227_v10 = vcombine.low %v417_v8, %v418_v5  ;;  %v422_v13 = vld [vmem:[%s3214_s16 + $0x1c] sm:$0xf]  ;;  %v2945_v14 = vld [vmem:[%s3971_s1] sm:$0xff]   ;;  %v2551_v29 = vcombine.low %v421_v12, %v421_v12  ;;  %s407_s29 = scalar_lea.vmem [#allocation2], %s2506_s19  ;;  %s3911_s0 = scalar_lea.hbm %s3964_s12, %s2600_s28 }
  0x20   : > { %2697 = vmatprep.mubr.msk.bf16.mxu0 %vm522_vm0, %v2509_v7  ;;  %2725 = vmatprep.mubr.msk.bf16.mxu1 %vm522_vm0, %v2509_v7  ;;  %v423_v15 = vld [vmem:[%s3214_s16 + $0x20] sm:$0xf]  ;;  %v424_v16 = vld [vmem:[%s3214_s16 + $0x24] sm:$0xf]  ;;  %v3246_v17 = vcombine.low %v421_v12, %v422_v13  ;;  %v427_v19 = vld [vmem:[%s3214_s16 + $0x30] sm:$0xf] }
  0x21   : > { %2698 = vmatmul.mubr.msk.bf16.vlgmr.msra.gmra.mxu0 %vm522_vm0, %v3227_v10  ;;  %v3248_v18 = vcombine.low %v423_v15, %v424_v16  ;;  %v428_v20 = vld [vmem:[%s3214_s16 + $0x34] sm:$0xf]  ;;  %v3257_v21 = vld [vmem:[%s3214_s16 + $0x28] sm:$0xff]   ;;  %v429_v23 = vld [vmem:[%s3214_s16 + $0x38] sm:$0xf]  ;;  %v2552_v27 = vcombine.low %v424_v16, %v424_v16  ;;  %v842_v30 = vshll.u32 %v2550_v25, 16  ;;  %v2553_v40 = vcombine.low %v427_v19, %v427_v19  ;;  %2726 = vmatmul.mubr.msk.bf16.vlgmr.msra.gmra.mxu1 %vm522_vm0, %v3227_v10 }
  0x22   : > { %2750 = vmatpush3.bf16.msra.mxu0 %v2935_v9  ;;  %2701 = vmatprep.mubr.msk.bf16.mxu0 %vm522_vm0, %v3230_v11  ;;  %v3259_v22 = vcombine.low %v427_v19, %v428_v20  ;;  %v430_v24 = vld [vmem:[%s3214_s16 + $0x3c] sm:$0xf]  ;;  %v2946_v28 = vld [vmem:[%s3214_s16 + $0x40] sm:$0xff]   ;;  %v433_v33 = vld [vmem:[%s3214_s16 + $0x48] sm:$0xf]  ;;  %v846_v35 = vrot.slane %v2551_v29, 7 }
  0x23   : > { %2751 = vmatprep.subr.bf16.mxu0 %v3965_v6  ;;  %v3267_v26 = vcombine.low %v429_v23, %v430_v24  ;;  %v849_v32 = vshll.u32 %v2552_v27, 16  ;;  %v434_v34 = vld [vmem:[%s3214_s16 + $0x4c] sm:$0xf]  ;;  %v435_v36 = vld [vmem:[%s3214_s16 + $0x50] sm:$0xf]  ;;  %v872_v38 = vsel %vm3271_vm3, %v3217_v3, %v842_v30  ;;  %v2554_v39 = vcombine.low %v430_v24, %v430_v24  ;;  %v2951_v52 = vld [vmem:[%s3214_s16 + $0x58] sm:$0xff]   ;;  %2729 = vmatprep.mubr.msk.bf16.mxu1 %vm522_vm0, %v3230_v11 }
  0x24   : > { %v436_v37 = vld [vmem:[%s3214_s16 + $0x54] sm:$0xf]  ;;  %v2518_v41 = vcombine.low %v433_v33, %v434_v34  ;;  %v876_v44 = vsel %vm869_vm1, %v872_v38, %v846_v35  ;;  %v854_v46 = vrot.slane %v2553_v40, 6  ;;  %v2555_v49 = vcombine.low %v433_v33, %v433_v33  ;;  %2758 = vmatpush3.bf16.msra.mxu1 %v3308_v60  ;;  %991 = vperm.xlu0 %2927, %v973_v1   ;;  %v2557_v29 = vld [vmem:[%s3957_s5] ss:$0 sm:$0xff]  ;;  %s2443_s15 = sshll.u32 %s407_s29, 4  ;;  %s3913_s15 = int_to_ptr.vmem [resolvable:$true] %s2443_s15 }
  0x25   : > { %v851_v42 = vrot.slane %v849_v32, 7  ;;  %v2519_v43 = vcombine.low %v435_v36, %v436_v37  ;;  %v857_v45 = vshll.u32 %v2554_v39, 16  ;;  %v2556_v48 = vcombine.low %v436_v37, %v436_v37  ;;  %2759 = vmatprep.subr.bf16.mxu1 %v3326_v61  ;;  %s2430_s20 = scalar_lea.sflag [#allocation3], %s405_s18  ;;  %s3022_s26 = scalar_lea.vmem %s3913_s15, 128 }
  0x26   : > { %2752 = vmatpush3.bf16.msra.mxu0 %v2945_v14  ;;  %v862_v54 = vrot.slane %v2555_v49, 5  ;;  %v975_v24 = vlaneseq  ;;  %p3023_p11 = scmp.ne.s32.totalorder %s3913_s15, %s3022_s26  ;;  %s3087_s25 = smov [#allocation2]  }
  0x27   : > { %v881_v47 = vsel %vm880_vm6, %v876_v44, %v851_v42  ;;  %v859_v50 = vrot.slane %v857_v45, 6  ;;  %v865_v53 = vshll.u32 %v2556_v48, 16  ;;  %s3026_s19 = sshll.u32 %s3087_s25, 4  ;;  %s3027_s19 = int_to_ptr.vmem [resolvable:$false] %s3026_s19 }
  0x28   : > { %v885_v51 = vsel %vm878_vm4, %v881_v47, %v854_v46  ;;  %2760 = vmatpush3.bf16.msra.mxu1 %v3326_v61  ;;  %v3369_v27 = vshrl.u32 %v975_v24, 7  ;;  %p3024_p12 = pnand %p3023_p11, %p3191_p5  ;;  %s3028_s16 = scalar_lea.vmem %s3027_s19, 256 }
  0x29   : > { %2702 = vmatmul.mubr.msk.bf16.gmra.mxu0 %vm522_vm0, %v3246_v17  ;;  %v890_v55 = vsel %vm889_vm9, %v885_v51, %v859_v50  ;;  %v867_v56 = vrot.slane %v865_v53, 5  ;;  %2730 = vmatmul.mubr.msk.bf16.gmra.mxu1 %vm522_vm0, %v3246_v17  ;;  %p3029_p0 = scmp.lt.s32.totalorder %s3913_s15, %s3027_s19  ;;  %p3030_p1 = scmp.lt.s32.totalorder %s3028_s16, %s3022_s26 }
  0x2a   : > { %2705 = vmatprep.mubr.msk.bf16.mxu0 %vm522_vm0, %v3248_v18  ;;  %v894_v57 = vsel %vm887_vm7, %v890_v55, %v862_v54  ;;  %2733 = vmatprep.mubr.msk.bf16.mxu1 %vm522_vm0, %v3248_v18  ;;  %v977_v33 = vsub.s32 0, %v3369_v27  ;;  %v1176_v34 = vsub.s32 1, %v3369_v27  ;;  %v1344_v46 = vsub.s32 2, %v3369_v27  ;;  %p3025_p13 = pneg %p3024_p12 }
  0x2b   : > { %v899_v58 = vsel %vm898_vm13, %v894_v57, %v867_v56  ;;  %2771 = vmatprep.subr.bf16.mxu1 %v3308_v60  ;;  %v1512_v0 = vsub.s32 3, %v3369_v27  ;;  %v1680_v24 = vsub.s32 4, %v3369_v27  ;;  %p3031_p2 = por %p3030_p1, %p3029_p0 }
  0x2d   : > { %p3032_p3 = pnand %p3031_p2, %p3025_p13 }
  0x31   : > { %2706 = vmatmul.mubr.msk.bf16.gmra.mxu0 %vm522_vm0, %v3257_v21  ;;  %2734 = vmatmul.mubr.msk.bf16.gmra.mxu1 %vm522_vm0, %v3257_v21 }
  0x32   : > { %2709 = vmatprep.mubr.msk.bf16.mxu0 %vm522_vm0, %v3259_v22  ;;  %2737 = vmatprep.mubr.msk.bf16.mxu1 %vm522_vm0, %v3259_v22 }
  0x39   : > { %2710 = vmatmul.mubr.msk.bf16.gmra.mxu0 %vm522_vm0, %v3267_v26  ;;  %2738 = vmatmul.mubr.msk.bf16.gmra.mxu1 %vm522_vm0, %v3267_v26 }
  0x3a   : > { %2713 = vmatprep.mubr.msk.bf16.mxu0 %vm522_vm0, %v2946_v28  ;;  %2741 = vmatprep.mubr.msk.bf16.mxu1 %vm522_vm0, %v2946_v28 }
  0x41   : > { %2714 = vmatmul.mubr.msk.bf16.gmra.mxu0 %vm522_vm0, %v2518_v41  ;;  %2742 = vmatmul.mubr.msk.bf16.gmra.mxu1 %vm522_vm0, %v2518_v41 }
  0x42   : > { %2717 = vmatprep.mubr.msk.bf16.mxu0 %vm522_vm0, %v2519_v43  ;;  %2745 = vmatprep.mubr.msk.bf16.mxu1 %vm522_vm0, %v2519_v43 }
  0x49   : > { %2718 = vmatmul.mubr.msk.bf16.gmra.mxu0 %vm522_vm0, %v2951_v52  ;;  %2746 = vmatmul.mubr.msk.bf16.gmra.mxu1 %vm522_vm0, %v2951_v52 }
  0x4a   : > { %2753 = vmatprep.mubr.msk.bf16.mxu0 %vm3085_vm12, %v3965_v6 }
  0x51   : > { %2754 = vmatmul.mubr.msk.bf16.vlgmr.msra.gmra.mxu0 %vm522_vm0, %v899_v58 }
  0xe1   : > { %v2699_v2 = vpop.f32.mrf.mxu0 }
  0xe2   : > { %v602_v37 = vadd.f32 %v2699_v2, %v3379_v31 }
  0xe3   : > { %v593_v3 = vpop.f32.mrf.mxu0 }
  0xe4   : > { %v594_v38 = vadd.f32 %v3379_v31, %v593_v3 }
  0xe5   : > { %v2700_v4 = vpop.f32.mrf.mxu0 }
  0xe6   : > { %v605_v40 = vadd.f32 %v2700_v4, %v3379_v31 }
  0xe7   : > { %v596_v5 = vpop.f32.mrf.mxu0 }
  0xe8   : > { %v597_v41 = vadd.f32 %v3379_v31, %v596_v5 }
  0xe9   : > { %v2703_v7 = vpop.f32.mrf.mxu0 }
  0xea   : > { %v618_v57 = vadd.f32 %v2703_v7, %v3379_v31 }
  0xeb   : > { %v609_v8 = vpop.f32.mrf.mxu0 }
  0xec   : > { %v610_v44 = vadd.f32 %v3379_v31, %v609_v8 }
  0xed   : > { %v2704_v9 = vpop.f32.mrf.mxu0 }
  0xee   : > { %v621_v58 = vadd.f32 %v2704_v9, %v3379_v31 }
  0xef   : > { %v612_v10 = vpop.f32.mrf.mxu0 }
  0xf0   : > { %v613_v56 = vadd.f32 %v3379_v31, %v612_v10 }
  0xf1   : > { %v3343_v11 = vpop.f32.mrf.mxu0 }
  0xf2   : > { %v634_v5 = vadd.f32 %v3343_v11, %v3379_v31 }
  0xf3   : > { %v625_v12 = vpop.f32.mrf.mxu0 }
  0xf4   : > { %v626_v4 = vadd.f32 %v3379_v31, %v625_v12 }
  0xf5   : > { %v3345_v13 = vpop.f32.mrf.mxu0 }
  0xf7   : > { %v628_v14 = vpop.f32.mrf.mxu0 }
  0xf8   : > { %v629_v7 = vadd.f32 %v3379_v31, %v628_v14  ;;  %v637_v14 = vadd.f32 %v3345_v13, %v3379_v31 }
  0xf9   : > { %v3347_v15 = vpop.f32.mrf.mxu0 }
  0xfb   : > { %v3349_v16 = vpop.f32.mrf.mxu0 }
  0xfd   : > { %v3351_v17 = vpop.f32.mrf.mxu0 }
  0xff   : > { %v3353_v18 = vpop.f32.mrf.mxu0 }
 0x101   : > { %v3355_v19 = vpop.f32.mrf.mxu0 }
 0x103   : > { %v3357_v20 = vpop.f32.mrf.mxu0 }
 0x105   : > { %v3359_v21 = vpop.f32.mrf.mxu0 }
 0x107   : > { %v3361_v22 = vpop.f32.mrf.mxu0 }
 0x109   : > { %v3363_v23 = vpop.f32.mrf.mxu0 }
 0x10b   : > { %v3365_v25 = vpop.f32.mrf.mxu0 }
 0x10d   : > { %v3367_v26 = vpop.f32.mrf.mxu0 }
 0x10f   : > { %v3371_v28 = vpop.f32.mrf.mxu0 }
 0x111   : > { %v960_v30 = vpop.f32.mrf.mxu0 }
 0x112   : > { %v961_v32 = vadd.f32 %v2557_v29, %v960_v30  ;;  %v642_v30 = vadd.f32 %v3379_v31, %v3349_v16 }
 0x113   : > { %v2755_v35 = vpop.f32.mrf.mxu0 }
 0x114   : > { %v3383_v36 = vmul.f32 0.35355338, %v961_v32  ;;  %v645_v32 = vadd.f32 %v3379_v31, %v3353_v18  ;;  %v650_v18 = vadd.f32 %v3347_v15, %v3379_v31 }
 0x115   : > { %v963_v39 = vpop.f32.mrf.mxu0 }
 0x116   : > { %v978_v42 = vrot.slane %v3383_v36, %v977_v33  ;;  %v1177_v43 = vrot.slane %v3383_v36, %v1176_v34  ;;  %v1345_v55 = vrot.slane %v3383_v36, %v1344_v46  ;;  %v1513_v3 = vrot.slane %v3383_v36, %v1512_v0 }
 0x117   : > { %v2756_v45 = vpop.f32.mrf.mxu0  ;;  %v1681_v11 = vrot.slane %v3383_v36, %v1680_v24  ;;  %v653_v39 = vadd.f32 %v3351_v17, %v3379_v31  ;;  %v666_v46 = vadd.f32 %v3355_v19, %v3379_v31 }
 0x118   : > { %v979_v47 = vmul.f32 %v978_v42, %v594_v38  ;;  %v980_v48 = vmul.f32 %v978_v42, %v597_v41  ;;  %v981_v49 = vmul.f32 %v978_v42, %v602_v37  ;;  %v1178_v50 = vmul.f32 %v1177_v43, %v605_v40 }
 0x119   : > { %v1179_v51 = vmul.f32 %v1177_v43, %v610_v44  ;;  %v1180_v59 = vmul.f32 %v1177_v43, %v613_v56  ;;  %v1346_v62 = vmul.f32 %v1345_v55, %v618_v57  ;;  %v1347_v63 = vmul.f32 %v1345_v55, %v621_v58 }
 0x11a   : > { %v982_v52 = vpack.c.bf16 %v980_v48, %v979_v47  ;;  %v983_v53 = vpack.c.bf16 %v981_v49, %v981_v49  ;;  %v1348_v8 = vmul.f32 %v1345_v55, %v626_v4  ;;  %v1514_v9 = vmul.f32 %v1513_v3, %v629_v7 }
 0x11b   : > { %v1181_v54 = vpack.c.bf16 %v1179_v51, %v1178_v50  ;;  %v1182_v1 = vpack.c.bf16 %v1180_v59, %v1180_v59  ;;  %v1349_v2 = vpack.c.bf16 %v1347_v63, %v1346_v62  ;;  %v1515_v10 = vmul.f32 %v1513_v3, %v634_v5  ;;  %v3512_v5 = vld [vmem:[%s3962_s10] sm:$0x3] }
 0x11c   : > { %2761 = vmatprep.mubr.msk.bf16.mxu1 %vm522_vm0, %v982_v52  ;;  %v1350_v12 = vpack.c.bf16 %v1348_v8, %v1348_v8  ;;  %v1516_v33 = vmul.f32 %v1513_v3, %v637_v14  ;;  %v1682_v34 = vmul.f32 %v1681_v11, %v642_v30  ;;  %v1683_v35 = vmul.f32 %v1681_v11, %v645_v32 }
 0x11d   : > { %2762 = vmatmul.mubr.msk.bf16.vlgmr.msra.gmra.mxu1 %vm522_vm0, %v983_v53  ;;  %v1517_v29 = vpack.c.bf16 %v1515_v10, %v1514_v9  ;;  %v1848_v37 = vsub.s32 5, %v3369_v27  ;;  %v658_v40 = vadd.f32 %v3379_v31, %v3357_v20  ;;  %v1684_v41 = vmul.f32 %v1681_v11, %v650_v18  ;;  %2877 = vmatprep.subr.msk.bf16.mxu0 %vm878_vm4, %v3512_v5 }
 0x11e   : > { %2772 = vmatpush3.bf16.msra.mxu1 %v3308_v60  ;;  %2775 = vmatprep.mubr.msk.bf16.mxu1 %vm522_vm0, %v1181_v54  ;;  %v1518_v13 = vpack.c.bf16 %v1516_v33, %v1516_v33  ;;  %v1685_v16 = vpack.c.bf16 %v1683_v35, %v1682_v34  ;;  %v2016_v44 = vsub.s32 6, %v3369_v27  ;;  %v661_v20 = vadd.f32 %v3379_v31, %v3361_v22  ;;  %v3545_v34 = vpop.permute.xlu0 %986 }
 0x11f   : > { %2773 = vmatprep.subr.bf16.mxu1 %v3326_v61  ;;  %v1849_v38 = vrot.slane %v3383_v36, %v1848_v37  ;;  %v1686_v15 = vpack.c.bf16 %v1684_v41, %v1684_v41  ;;  %v669_v47 = vadd.f32 %v3359_v21, %v3379_v31  ;;  %v2184_v51 = vsub.s32 7, %v3369_v27 }
 0x120   : > { %v2017_v45 = vrot.slane %v3383_v36, %v2016_v44  ;;  %v674_v21 = vadd.f32 %v3379_v31, %v3365_v25  ;;  %v682_v53 = vadd.f32 %v3363_v23, %v3379_v31  ;;  %v677_v54 = vadd.f32 %v3379_v31, %v3371_v28 }
 0x121   : > { %v1850_v42 = vmul.f32 %v1849_v38, %v653_v39  ;;  %v1851_v43 = vmul.f32 %v1849_v38, %v658_v40  ;;  %v1852_v48 = vmul.f32 %v1849_v38, %v661_v20  ;;  %v2185_v52 = vrot.slane %v3383_v36, %v2184_v51 }
 0x122   : > { %2774 = vmatpush3.bf16.msra.mxu1 %v3326_v61  ;;  %v2018_v49 = vmul.f32 %v2017_v45, %v666_v46  ;;  %v2019_v50 = vmul.f32 %v2017_v45, %v669_v47  ;;  %v2020_v27 = vmul.f32 %v2017_v45, %v674_v21  ;;  %v685_v23 = vadd.f32 %v3367_v26, %v3379_v31  ;;  %v3483_v26 = vpop.f32.mrf.mxu1  ;;  %v3550_v18 = vpop.permute.xlu0 %991 }
 0x123   : > { %2785 = vmatprep.subr.bf16.mxu1 %v3308_v60  ;;  %v1853_v17 = vpack.c.bf16 %v1851_v43, %v1850_v42  ;;  %v1854_v22 = vpack.c.bf16 %v1852_v48, %v1852_v48  ;;  %v2186_v55 = vmul.f32 %v2185_v52, %v677_v54  ;;  %v2187_v36 = vmul.f32 %v2185_v52, %v682_v53 }
 0x124   : > { %v2021_v19 = vpack.c.bf16 %v2019_v50, %v2018_v49  ;;  %v2022_v25 = vpack.c.bf16 %v2020_v27, %v2020_v27  ;;  %v2188_v28 = vmul.f32 %v2185_v52, %v685_v23  ;;  %v3485_v31 = vpop.f32.mrf.mxu1  ;;  %v3518_v7 = vsel %vm878_vm4, %v3512_v5, 0 }
 0x125   : > { %2776 = vmatmul.mubr.msk.bf16.vlgmr.msra.gmra.mxu1 %vm522_vm0, %v1182_v1  ;;  %v2189_v56 = vpack.c.bf16 %v2187_v36, %v2186_v55  ;;  %2766 = vmatpush3.bf16.msra.mxu0 %v3518_v7 }
 0x126   : > { %2786 = vmatpush3.bf16.msra.mxu1 %v3308_v60  ;;  %2789 = vmatprep.mubr.msk.bf16.mxu1 %vm522_vm0, %v1349_v2  ;;  %v2190_v57 = vpack.c.bf16 %v2188_v28, %v2188_v28 }
 0x127   : > { %2787 = vmatprep.subr.bf16.mxu1 %v3326_v61  ;;  %2878 = vmatprep.subr.msk.bf16.mxu0 %vm878_vm4, %v3512_v5 }
 0x12a   : > { %2788 = vmatpush3.bf16.msra.mxu1 %v3326_v61 }
 0x12b   : > { %2799 = vmatprep.subr.bf16.mxu1 %v3308_v60 }
 0x12d   : > { %2790 = vmatmul.mubr.msk.bf16.vlgmr.msra.gmra.mxu1 %vm522_vm0, %v1350_v12 }
 0x12e   : > { %2800 = vmatpush3.bf16.msra.mxu1 %v3308_v60  ;;  %2803 = vmatprep.mubr.msk.bf16.mxu1 %vm522_vm0, %v1517_v29 }
 0x12f   : > { %2801 = vmatprep.subr.bf16.mxu1 %v3326_v61 }
 0x132   : > { %2802 = vmatpush3.bf16.msra.mxu1 %v3326_v61 }
 0x133   : > { %2813 = vmatprep.subr.bf16.mxu1 %v3308_v60 }
 0x135   : > { %2804 = vmatmul.mubr.msk.bf16.vlgmr.msra.gmra.mxu1 %vm522_vm0, %v1518_v13  ;;  %v3547_v13 = vpop.permute.xlu1 %996 }
 0x136   : > { %2814 = vmatpush3.bf16.msra.mxu1 %v3308_v60  ;;  %2817 = vmatprep.mubr.msk.bf16.mxu1 %vm522_vm0, %v1685_v16 }
 0x137   : > { %2815 = vmatprep.subr.bf16.mxu1 %v3326_v61 }
 0x13a   : > { %2816 = vmatpush3.bf16.msra.mxu1 %v3326_v61 }
 0x13b   : > { %2827 = vmatprep.subr.bf16.mxu1 %v3308_v60 }
 0x13d   : > { %2818 = vmatmul.mubr.msk.bf16.vlgmr.msra.gmra.mxu1 %vm522_vm0, %v1686_v15 }
 0x13e   : > { %2828 = vmatpush3.bf16.msra.mxu1 %v3308_v60  ;;  %2831 = vmatprep.mubr.msk.bf16.mxu1 %vm522_vm0, %v1853_v17 }
 0x13f   : > { %2829 = vmatprep.subr.bf16.mxu1 %v3326_v61 }
 0x142   : > { %2830 = vmatpush3.bf16.msra.mxu1 %v3326_v61 }
 0x143   : > { %2841 = vmatprep.subr.bf16.mxu1 %v3308_v60 }
 0x145   : > { %2832 = vmatmul.mubr.msk.bf16.vlgmr.msra.gmra.mxu1 %vm522_vm0, %v1854_v22 }
 0x146   : > { %2842 = vmatpush3.bf16.msra.mxu1 %v3308_v60  ;;  %2845 = vmatprep.mubr.msk.bf16.mxu1 %vm522_vm0, %v2021_v19 }
 0x147   : > { %2843 = vmatprep.subr.bf16.mxu1 %v3326_v61 }
 0x14a   : > { %2844 = vmatpush3.bf16.msra.mxu1 %v3326_v61 }
 0x14b   : > { %2855 = vmatprep.subr.bf16.mxu1 %v3308_v60 }
 0x14d   : > { %2846 = vmatmul.mubr.msk.bf16.vlgmr.msra.gmra.mxu1 %vm522_vm0, %v2022_v25 }
 0x14e   : > { %2856 = vmatpush3.bf16.msra.mxu1 %v3308_v60  ;;  %2859 = vmatprep.mubr.msk.bf16.mxu1 %vm522_vm0, %v2189_v56  ;;  %v3487_v60 = vpop.f32.mrf.mxu1 }
 0x14f   : > { %2857 = vmatprep.subr.bf16.mxu1 %v3326_v61 }
 0x150   : > { %v3489_v58 = vpop.f32.mrf.mxu1 }
 0x152   : > { %2858 = vmatpush3.bf16.msra.mxu1 %v3326_v61  ;;  %v3491_v59 = vpop.f32.mrf.mxu1 }
 0x153   : > { %2869 = vmatprep.subr.bf16.mxu1 %v3965_v6 }
 0x154   : > { %v3493_v62 = vpop.f32.mrf.mxu1 }
 0x155   : > { %2860 = vmatmul.mubr.msk.bf16.vlgmr.msra.gmra.mxu1 %vm522_vm0, %v2190_v57 }
 0x156   : > { %2873 = vmatprep.mubr.msk.bf16.mxu1 %vm3085_vm12, %v3965_v6  ;;  %v3495_v61 = vpop.f32.mrf.mxu1 }
 0x158   : > { %v3497_v63 = vpop.f32.mrf.mxu1 }
 0x15a   : > { %v3499_v0 = vpop.f32.mrf.mxu1 }
 0x15c   : > { %v3501_v1 = vpop.f32.mrf.mxu1 }
 0x15e   : > { %v3503_v2 = vpop.f32.mrf.mxu1 }
 0x160   : > { %v3505_v3 = vpop.f32.mrf.mxu1 }
 0x162   : > { %v3507_v4 = vpop.f32.mrf.mxu1 }
 0x164   : > { %v3520_v8 = vpop.f32.mrf.mxu1 }
 0x166   : > { %v3525_v9 = vpop.f32.mrf.mxu1 }
 0x168   : > { %v3527_v10 = vpop.f32.mrf.mxu1 }
 0x16a   : > { %v3529_v24 = vpop.f32.mrf.mxu1 }
 0x16c   : > { %v3531_v12 = vpop.f32.mrf.mxu1 }
 0x16e   : > { %v3533_v29 = vpop.f32.mrf.mxu1 }
 0x170   : > { %v3535_v11 = vpop.f32.mrf.mxu1 }
 0x172   : > { %v3537_v14 = vpop.f32.mrf.mxu1 }
 0x173   : > { %3974 = vst [vmem:[#allocation5_spill] sm:$0xff] %v3537_v14 }
 0x174   : > { %v3539_v30 = vpop.f32.mrf.mxu1 }
 0x175   : > { %3975 = vst [vmem:[#allocation6_spill] sm:$0xff] %v3539_v30 }
 0x176   : > { %v3541_v32 = vpop.f32.mrf.mxu1 }
 0x177   : > { %3976 = vst [vmem:[#allocation7_spill] sm:$0xff] %v3541_v32 }
 0x178   : > { %v3543_v33 = vpop.f32.mrf.mxu1 }
 0x179   : > { %3977 = vst [vmem:[#allocation8_spill] sm:$0xff] %v3543_v33 }
 0x1dd   : > { %v2763_v35 = vpop.f32.mrf.mxu1 }
 0x1de   : > { %v1060_v40 = vadd.f32 %v2763_v35, %v3547_v13 }
 0x1df   : > { %v1051_v37 = vpop.f32.mrf.mxu1 }
 0x1e0   : > { %v1052_v38 = vadd.f32 %v1051_v37, %v3545_v34  ;;  %v1068_v45 = vsel %vm1065_vm14, %v1060_v40, -inf }
 0x1e1   : > { %v2764_v16 = vpop.f32.mrf.mxu1 }
 0x1e2   : > { %v1066_v43 = vsel %vm1065_vm14, %v1052_v38, -inf }
 0x1e3   : > { %v1054_v39 = vpop.f32.mrf.mxu1 }
 0x1e4   : > { %v1055_v41 = vadd.f32 %v1054_v39, %v3550_v18 }
 0x1e5   : > { %v2777_v42 = vpop.f32.mrf.mxu1 }
 0x1e6   : > { %v1067_v44 = vsel %vm1065_vm14, %v1055_v41, -inf  ;;  %v1232_v50 = vadd.f32 %v2777_v42, %v3547_v13 }
 0x1e7   : > { %v1069_v15 = vmax.f32 %v1066_v43, %v1067_v44  ;;  %v1223_v17 = vpop.f32.mrf.mxu1 }
 0x1e8   : > { %v1224_v47 = vadd.f32 %v1223_v17, %v3545_v34  ;;  %v1239_v55 = vsel %vm1065_vm14, %v1232_v50, -inf }
 0x1e9   : > { %v1070_v20 = vmax.f32 %v1069_v15, %v1068_v45  ;;  %v2778_v46 = vpop.f32.mrf.mxu1 }
 0x1ea   : > { %v1237_v52 = vsel %vm1065_vm14, %v1224_v47, -inf }
 0x1eb   : > { %v1071_v48 = vrot.slane %v1070_v20, 4  ;;  %v1226_v49 = vpop.f32.mrf.mxu1 }
 0x1ec   : > { %v1227_v51 = vadd.f32 %v1226_v49, %v3550_v18 }
 0x1ed   : > { %v1072_v22 = vmax.f32 %v1070_v20, %v1071_v48  ;;  %v2791_v19 = vpop.f32.mrf.mxu1 }
 0x1ee   : > { %v1238_v21 = vsel %vm1065_vm14, %v1227_v51, -inf  ;;  %v3567_v37 = vadd.f32 %v2791_v19, %v3547_v13 }
 0x1ef   : > { %v1073_v53 = vrot.slane %v1072_v22, 2  ;;  %v1240_v54 = vmax.f32 %v1237_v52, %v1238_v21  ;;  %v1391_v27 = vpop.f32.mrf.mxu1 }
 0x1f0   : > { %v3564_v23 = vadd.f32 %v1391_v27, %v3545_v34  ;;  %v1407_v49 = vsel %vm1065_vm14, %v3567_v37, -inf }
 0x1f1   : > { %v1074_v36 = vmax.f32 %v1072_v22, %v1073_v53  ;;  %v1241_v25 = vmax.f32 %v1240_v54, %v1239_v55  ;;  %v2792_v56 = vpop.f32.mrf.mxu1 }
 0x1f2   : > { %v1405_v44 = vsel %vm1065_vm14, %v3564_v23, -inf }
 0x1f3   : > { %v1075_v28 = vrot.slane %v1074_v36, 1  ;;  %v1242_v57 = vrot.slane %v1241_v25, 4  ;;  %v1394_v35 = vpop.f32.mrf.mxu1 }
 0x1f4   : > { %v3570_v16 = vadd.f32 %v1394_v35, %v3550_v18 }
 0x1f5   : > { %v1076_v39 = vmax.f32 %v1074_v36, %v1075_v28  ;;  %v1243_v42 = vmax.f32 %v1241_v25, %v1242_v57  ;;  %v2805_v43 = vpop.f32.mrf.mxu1 }
 0x1f6   : > { %v1406_v15 = vsel %vm1065_vm14, %v3570_v16, -inf }
 0x1f7   : > { %v1077_v17 = vsub.f32 %v1052_v38, %v1076_v39  ;;  %v1078_v45 = vsub.f32 %v1055_v41, %v1076_v39  ;;  %v1079_v20 = vsub.f32 %v1060_v40, %v1076_v39  ;;  %v1244_v46 = vrot.slane %v1243_v42, 2  ;;  %v1559_v48 = vpop.f32.mrf.mxu1 }
 0x1f8   : > { %v1408_v22 = vmax.f32 %v1405_v44, %v1406_v15  ;;  %v3579_v55 = vadd.f32 %v1559_v48, %v3545_v34  ;;  %v3582_v41 = vadd.f32 %v2805_v43, %v3547_v13 }
 0x1f9   : > { %v1080_v19 = vmul.f32 1.442695, %v1077_v17  ;;  %v1082_v52 = vmul.f32 1.442695, %v1078_v45  ;;  %v1084_v21 = vmul.f32 1.442695, %v1079_v20  ;;  %v1245_v53 = vmax.f32 %v1243_v42, %v1244_v46  ;;  %v2806_v54 = vpop.f32.mrf.mxu1 }
 0x1fa   : > { %v1409_v27 = vmax.f32 %v1408_v22, %v1407_v49  ;;  %v1573_v35 = vsel %vm1065_vm14, %v3579_v55, -inf  ;;  %v1575_v20 = vsel %vm1065_vm14, %v3582_v41, -inf }
 0x1fb   : > { %2958 = vpow2.f32 %v1080_v19  ;;  %v1246_v36 = vrot.slane %v1245_v53, 1  ;;  %v1562_v38 = vpop.f32.mrf.mxu1 }
 0x1fc   : > { %2960 = vpow2.f32 %v1082_v52  ;;  %v1410_v40 = vrot.slane %v1409_v27, 4  ;;  %v3585_v25 = vadd.f32 %v1562_v38, %v3550_v18 }
 0x1fd   : > { %2962 = vpow2.f32 %v1084_v21  ;;  %v1247_v56 = vmax.f32 %v1245_v53, %v1246_v36  ;;  %v2819_v28 = vpop.f32.mrf.mxu1 }
 0x1fe   : > { %v1411_v57 = vmax.f32 %v1409_v27, %v1410_v40  ;;  %v1574_v39 = vsel %vm1065_vm14, %v3585_v25, -inf }
 0x1ff   : > { %v1248_v42 = vsub.f32 %v1224_v47, %v1247_v56  ;;  %v1249_v44 = vsub.f32 %v1227_v51, %v1247_v56  ;;  %v1250_v15 = vsub.f32 %v1232_v50, %v1247_v56  ;;  %v1576_v17 = vmax.f32 %v1573_v35, %v1574_v39  ;;  %v1727_v45 = vpop.f32.mrf.mxu1 }
 0x200   : > { %v1412_v43 = vrot.slane %v1411_v57, 2  ;;  %v3594_v21 = vadd.f32 %v1727_v45, %v3545_v34  ;;  %v3597_v51 = vadd.f32 %v2819_v28, %v3547_v13 }
 0x201   : > { %v1251_v46 = vmul.f32 1.442695, %v1248_v42  ;;  %v1253_v48 = vmul.f32 1.442695, %v1249_v44  ;;  %v1255_v49 = vmul.f32 1.442695, %v1250_v15  ;;  %v1577_v22 = vmax.f32 %v1576_v17, %v1575_v20  ;;  %v2820_v19 = vpop.f32.mrf.mxu1 }
 0x202   : > { %v1413_v52 = vmax.f32 %v1411_v57, %v1412_v43  ;;  %v1741_v40 = vsel %vm1065_vm14, %v3594_v21, -inf  ;;  %v1743_v17 = vsel %vm1065_vm14, %v3597_v51, -inf }
 0x203   : > { %2964 = vpow2.f32 %v1251_v46  ;;  %v1578_v53 = vrot.slane %v1577_v22, 4  ;;  %v1730_v47 = vpop.f32.mrf.mxu1 }
 0x204   : > { %2966 = vpow2.f32 %v1253_v48  ;;  %v1414_v50 = vrot.slane %v1413_v52, 1  ;;  %v3600_v54 = vadd.f32 %v1730_v47, %v3550_v18 }
 0x205   : > { %2968 = vpow2.f32 %v1255_v49  ;;  %v1579_v27 = vmax.f32 %v1577_v22, %v1578_v53  ;;  %v2833_v36 = vpop.f32.mrf.mxu1 }
 0x206   : > { %v1415_v38 = vmax.f32 %v1413_v52, %v1414_v50  ;;  %v1742_v56 = vsel %vm1065_vm14, %v3600_v54, -inf  ;;  %v3625_v47 = vadd.f32 %v2833_v36, %v3547_v13 }
 0x207   : > { %v1580_v57 = vrot.slane %v1579_v27, 2  ;;  %v1744_v35 = vmax.f32 %v1741_v40, %v1742_v56  ;;  %v1895_v39 = vpop.f32.mrf.mxu1 }
 0x208   : > { %v3606_v42 = vpop.eup %2958  ;;  %v1416_v28 = vsub.f32 %v3564_v23, %v1415_v38  ;;  %v1417_v44 = vsub.f32 %v3570_v16, %v1415_v38  ;;  %v1418_v15 = vsub.f32 %v3567_v37, %v1415_v38  ;;  %v3622_v37 = vadd.f32 %v1895_v39, %v3545_v34 }
 0x209   : > { %v3613_v45 = vpop.eup %2960  ;;  %v1086_v43 = vsel %vm1065_vm14, %v3606_v42, 0.0  ;;  %v1581_v20 = vmax.f32 %v1579_v27, %v1580_v57  ;;  %v1745_v46 = vmax.f32 %v1744_v35, %v1743_v17  ;;  %v2834_v48 = vpop.f32.mrf.mxu1 }
 0x20a   : > { %v3617_v49 = vpop.eup %2962  ;;  %v1087_v23 = vsel %vm1065_vm14, %v3613_v45, 0.0  ;;  %v1419_v22 = vmul.f32 1.442695, %v1416_v28  ;;  %v1421_v16 = vmul.f32 1.442695, %v1417_v44  ;;  %v1909_v28 = vsel %vm1065_vm14, %v3622_v37, -inf }
 0x20b   : > { %v1088_v19 = vadd.f32 %v1087_v23, %v1086_v43  ;;  %v1423_v52 = vmul.f32 1.442695, %v1418_v15  ;;  %v1582_v53 = vrot.slane %v1581_v20, 1  ;;  %v1898_v50 = vpop.f32.mrf.mxu1  ;;  %v1089_v27 = vsel %vm1065_vm14, %v3617_v49, 0.0 }
 0x20c   : > { %2970 = vpow2.f32 %v1419_v22  ;;  %v1746_v38 = vrot.slane %v1745_v46, 4  ;;  %v3630_v40 = vadd.f32 %v1898_v50, %v3550_v18 }
 0x20d   : > { %v1090_v56 = vadd.f32 %v1089_v27, %v1088_v19  ;;  %2972 = vpow2.f32 %v1421_v16  ;;  %v1583_v57 = vmax.f32 %v1581_v20, %v1582_v53  ;;  %v2847_v35 = vpop.f32.mrf.mxu1 }
 0x20e   : > { %2974 = vpow2.f32 %v1423_v52  ;;  %v1747_v39 = vmax.f32 %v1745_v46, %v1746_v38  ;;  %v1910_v36 = vsel %vm1065_vm14, %v3630_v40, -inf  ;;  %v1911_v46 = vsel %vm1065_vm14, %v3625_v47, -inf }
 0x20f   : > { %v1091_v44 = vrot.slane %v1090_v56, 4  ;;  %v1584_v15 = vsub.f32 %v3579_v55, %v1583_v57  ;;  %v1585_v17 = vsub.f32 %v3585_v25, %v1583_v57  ;;  %v1586_v43 = vsub.f32 %v3582_v41, %v1583_v57  ;;  %v2063_v48 = vpop.f32.mrf.mxu1 }
 0x210   : > { %v3639_v23 = vpop.eup %2964  ;;  %v1748_v20 = vrot.slane %v1747_v39, 2  ;;  %v1912_v22 = vmax.f32 %v1909_v28, %v1910_v36  ;;  %v3644_v16 = vadd.f32 %v2847_v35, %v3547_v13  ;;  %v3655_v6 = vadd.f32 %v2063_v48, %v3545_v34 }
 0x211   : > { %v3646_v19 = vpop.eup %2966  ;;  %v1092_v52 = vadd.f32 %v1091_v44, %v1090_v56  ;;  %v1257_v55 = vsel %vm1065_vm14, %v3639_v23, 0.0  ;;  %v1587_v25 = vmul.f32 1.442695, %v1584_v15  ;;  %v1589_v53 = vmul.f32 1.442695, %v1585_v17  ;;  %v2848_v41 = vpop.f32.mrf.mxu1 }
 0x212   : > { %v3650_v50 = vpop.eup %2968  ;;  %v1258_v27 = vsel %vm1065_vm14, %v3646_v19, 0.0  ;;  %v1591_v38 = vmul.f32 1.442695, %v1586_v43  ;;  %v1749_v57 = vmax.f32 %v1747_v39, %v1748_v20  ;;  %v1913_v28 = vmax.f32 %v1912_v22, %v1911_v46 }
 0x213   : > { %v1093_v36 = vrot.slane %v1092_v52, 2  ;;  %v1259_v35 = vadd.f32 %v1258_v27, %v1257_v55  ;;  %2976 = vpow2.f32 %v1587_v25  ;;  %v2066_v56 = vpop.f32.mrf.mxu1  ;;  %v1260_v44 = vsel %vm1065_vm14, %v3650_v50, 0.0 }
 0x214   : > { %2978 = vpow2.f32 %v1589_v53  ;;  %v1750_v15 = vrot.slane %v1749_v57, 1  ;;  %v1914_v17 = vrot.slane %v1913_v28, 4  ;;  %v3660_v43 = vadd.f32 %v2066_v56, %v3550_v18 }
 0x215   : > { %v1094_v41 = vadd.f32 %v1093_v36, %v1092_v52  ;;  %v1261_v32 = vadd.f32 %v1260_v44, %v1259_v35  ;;  %2980 = vpow2.f32 %v1591_v38  ;;  %v2861_v39 = vpop.f32.mrf.mxu1  ;;  %v2077_v48 = vsel %vm1065_vm14, %v3655_v6, -inf }
 0x216   : > { %v1751_v20 = vmax.f32 %v1749_v57, %v1750_v15  ;;  %v1915_v46 = vmax.f32 %v1913_v28, %v1914_v17  ;;  %v2078_v25 = vsel %vm1065_vm14, %v3660_v43, -inf  ;;  %v2079_v56 = vsel %vm1065_vm14, %v3644_v16, -inf }
 0x217   : > { %v1095_v22 = vrot.slane %v1094_v41, 1  ;;  %v1262_v55 = vrot.slane %v1261_v32, 4  ;;  %v2231_v53 = vpop.f32.mrf.mxu1  ;;  %v2080_v44 = vmax.f32 %v2077_v48, %v2078_v25 }
 0x218   : > { %v1752_v27 = vsub.f32 %v3594_v21, %v1751_v20  ;;  %v1753_v52 = vsub.f32 %v3600_v54, %v1751_v20  ;;  %v1754_v38 = vsub.f32 %v3597_v51, %v1751_v20  ;;  %v1916_v36 = vrot.slane %v1915_v46, 2 }
 0x219   : > { %v3669_v35 = vpop.eup %2970  ;;  %v1096_v57 = vadd.f32 %v1095_v22, %v1094_v41  ;;  %v1263_v28 = vadd.f32 %v1262_v55, %v1261_v32  ;;  %v2862_v15 = vpop.f32.mrf.mxu1 }
 0x21a   : > { %v3673_v17 = vpop.eup %2972  ;;  %v1425_v14 = vsel %vm1065_vm14, %v3669_v35, 0.0  ;;  %v1755_v21 = vmul.f32 1.442695, %v1752_v27  ;;  %v1757_v33 = vmul.f32 1.442695, %v1753_v52  ;;  %v1917_v54 = vmax.f32 %v1915_v46, %v1916_v36 }
 0x21b   : > { %v3677_v30 = vpop.eup %2974  ;;  %2982 = vrcp.f32 %v1096_v57  ;;  %v1264_v51 = vrot.slane %v1263_v28, 2  ;;  %v1426_v32 = vsel %vm1065_vm14, %v3673_v17, 0.0  ;;  %v1759_v41 = vmul.f32 1.442695, %v1754_v38  ;;  %v2234_v20 = vpop.f32.mrf.mxu1 }
 0x21c   : > { %v1427_v22 = vadd.f32 %v1426_v32, %v1425_v14  ;;  %v1428_v55 = vsel %vm1065_vm14, %v3677_v30, 0.0  ;;  %2984 = vpow2.f32 %v1755_v21  ;;  %v1918_v48 = vrot.slane %v1917_v54, 1 }
 0x21d   : > { %v1265_v25 = vadd.f32 %v1264_v51, %v1263_v28  ;;  %2986 = vpow2.f32 %v1757_v33  ;;  %v2081_v27 = vmax.f32 %v2080_v44, %v2079_v56  ;;  %v3684_v46 = vadd.f32 %v2231_v53, %v3545_v34 }
 0x21e   : > { %v1429_v52 = vadd.f32 %v1428_v55, %v1427_v22  ;;  %2988 = vpow2.f32 %v1759_v41  ;;  %v1919_v36 = vmax.f32 %v1917_v54, %v1918_v48  ;;  %v3687_v57 = vadd.f32 %v2234_v20, %v3550_v18 }
 0x21f   : > { %v1266_v38 = vrot.slane %v1265_v25, 1  ;;  %v2082_v15 = vrot.slane %v2081_v27, 4  ;;  %v3690_v14 = vadd.f32 %v2861_v39, %v3547_v13  ;;  %v2245_v21 = vsel %vm1065_vm14, %v3684_v46, -inf }
 0x220   : > { %v3694_v28 = vpop.eup %2976  ;;  %v1430_v33 = vrot.slane %v1429_v52, 4  ;;  %v1920_v34 = vsub.f32 %v3622_v37, %v1919_v36  ;;  %v1921_v53 = vsub.f32 %v3630_v40, %v1919_v36  ;;  %v1922_v56 = vsub.f32 %v3625_v47, %v1919_v36 }
 0x221   : > { %v3699_v44 = vpop.eup %2978  ;;  %v1267_v18 = vadd.f32 %v1266_v38, %v1265_v25  ;;  %v1593_v54 = vsel %vm1065_vm14, %v3694_v28, 0.0  ;;  %v2083_v13 = vmax.f32 %v2081_v27, %v2082_v15  ;;  %v2246_v39 = vsel %vm1065_vm14, %v3687_v57, -inf }
 0x222   : > { %v3705_v51 = vpop.eup %2980  ;;  %v1431_v32 = vadd.f32 %v1430_v33, %v1429_v52  ;;  %v1594_v37 = vsel %vm1065_vm14, %v3699_v44, 0.0  ;;  %v1923_v41 = vmul.f32 1.442695, %v1920_v34  ;;  %v1925_v40 = vmul.f32 1.442695, %v1921_v53 }
 0x223   : > { %2990 = vrcp.f32 %v1267_v18  ;;  %v1595_v47 = vadd.f32 %v1594_v37, %v1593_v54  ;;  %v1596_v20 = vsel %vm1065_vm14, %v3705_v51, 0.0  ;;  %v1927_v22 = vmul.f32 1.442695, %v1922_v56 }
 0x224   : > { %v1432_v55 = vrot.slane %v1431_v32, 2  ;;  %2992 = vpow2.f32 %v1923_v41  ;;  %v2084_v48 = vrot.slane %v2083_v13, 2  ;;  %v2248_v25 = vmax.f32 %v2245_v21, %v2246_v39 }
 0x225   : > { %v1597_v27 = vadd.f32 %v1596_v20, %v1595_v47  ;;  %2994 = vpow2.f32 %v1925_v40  ;;  %v2247_v52 = vsel %vm1065_vm14, %v3690_v14, -inf }
 0x226   : > { %v1433_v36 = vadd.f32 %v1432_v55, %v1431_v32  ;;  %2996 = vpow2.f32 %v1927_v22  ;;  %v2085_v38 = vmax.f32 %v2083_v13, %v2084_v48  ;;  %v2249_v15 = vmax.f32 %v2248_v25, %v2247_v52 }
 0x227   : > { %v1598_v33 = vrot.slane %v1597_v27, 4 }
 0x228   : > { %v2983_v34 = vpop.eup %2982  ;;  %v1434_v53 = vrot.slane %v1433_v36, 1  ;;  %v2086_v18 = vrot.slane %v2085_v38, 1  ;;  %v2250_v54 = vrot.slane %v2249_v15, 4 }
 0x229   : > { %v3713_v37 = vpop.eup %2984  ;;  %v1599_v56 = vadd.f32 %v1598_v33, %v1597_v27  ;;  %v1098_v41 = vmul.f32 %v2983_v34, %v3606_v42  ;;  %v1099_v21 = vmul.f32 %v2983_v34, %v3613_v45  ;;  %v1100_v39 = vmul.f32 %v2983_v34, %v3617_v49 }
 0x22a   : > { %v3718_v40 = vpop.eup %2986  ;;  %v1435_v32 = vadd.f32 %v1434_v53, %v1433_v36  ;;  %v1761_v13 = vsel %vm1065_vm14, %v3713_v37, 0.0  ;;  %v2087_v47 = vmax.f32 %v2085_v38, %v2086_v18  ;;  %v2251_v20 = vmax.f32 %v2249_v15, %v2250_v54 }
 0x22b   : > { %v3722_v22 = vpop.eup %2988  ;;  %v1600_v55 = vrot.slane %v1599_v56, 2  ;;  %v1762_v48 = vsel %vm1065_vm14, %v3718_v40, 0.0  ;;  %v1101_v25 = vpack.c.bf16 %v1099_v21, %v1098_v41  ;;  %v1102_v42 = vpack.c.bf16 %v1100_v39, %v1100_v39 }
 0x22c   : > { %2998 = vrcp.f32 %v1435_v32  ;;  %v1763_v45 = vadd.f32 %v1762_v48, %v1761_v13  ;;  %v1764_v49 = vsel %vm1065_vm14, %v3722_v22, 0.0  ;;  %v2088_v27 = vsub.f32 %v3655_v6, %v2087_v47 }
 0x22d   : > { %v1601_v52 = vadd.f32 %v1600_v55, %v1599_v56  ;;  %v2089_v36 = vsub.f32 %v3660_v43, %v2087_v47  ;;  %v2090_v38 = vsub.f32 %v3644_v16, %v2087_v47  ;;  %v2252_v15 = vrot.slane %v2251_v20, 2  ;;  %2767 = vmatprep.mubr.msk.bf16.mxu0 %vm1065_vm14, %v1101_v25 }
 0x22e   : > { %v1765_v33 = vadd.f32 %v1764_v49, %v1763_v45  ;;  %v2091_v34 = vmul.f32 1.442695, %v2088_v27  ;;  %2768 = vmatmul.mubr.msk.bf16.vlgmr.msra.gmra.mxu0 %vm1065_vm14, %v1102_v42 }
 0x22f   : > { %v1602_v53 = vrot.slane %v1601_v52, 1  ;;  %v2093_v18 = vmul.f32 1.442695, %v2089_v36  ;;  %v2095_v54 = vmul.f32 1.442695, %v2090_v38  ;;  %v2253_v41 = vmax.f32 %v2251_v20, %v2252_v15  ;;  %2780 = vmatpush3.bf16.msra.mxu0 %v3518_v7 }
 0x230   : > { %v2991_v21 = vpop.eup %2990  ;;  %v1766_v6 = vrot.slane %v1765_v33, 4  ;;  %3000 = vpow2.f32 %v2091_v34  ;;  %2879 = vmatprep.subr.msk.bf16.mxu0 %vm878_vm4, %v3512_v5 }
 0x231   : > { %v3736_v16 = vpop.eup %2992  ;;  %v1603_v43 = vadd.f32 %v1602_v53, %v1601_v52  ;;  %3002 = vpow2.f32 %v2093_v18  ;;  %v2254_v56 = vrot.slane %v2253_v41, 1  ;;  %v1269_v39 = vmul.f32 %v2991_v21, %v3639_v23 }
 0x232   : > { %v3739_v32 = vpop.eup %2994  ;;  %v1767_v13 = vadd.f32 %v1766_v6, %v1765_v33  ;;  %v1929_v47 = vsel %vm1065_vm14, %v3736_v16, 0.0  ;;  %3004 = vpow2.f32 %v2095_v54  ;;  %v1270_v20 = vmul.f32 %v2991_v21, %v3646_v19 }
 0x233   : > { %v3744_v55 = vpop.eup %2996  ;;  %3006 = vrcp.f32 %v1603_v43  ;;  %v1930_v48 = vsel %vm1065_vm14, %v3739_v32, 0.0  ;;  %v2255_v25 = vmax.f32 %v2253_v41, %v2254_v56  ;;  %v1271_v42 = vmul.f32 %v2991_v21, %v3650_v50 }
 0x234   : > { %v1768_v45 = vrot.slane %v1767_v13, 2  ;;  %v1931_v23 = vadd.f32 %v1930_v48, %v1929_v47  ;;  %v1932_v49 = vsel %vm1065_vm14, %v3744_v55, 0.0  ;;  %v1272_v27 = vpack.c.bf16 %v1270_v20, %v1269_v39 }
 0x235   : > { %v2256_v52 = vsub.f32 %v3684_v46, %v2255_v25  ;;  %v2257_v36 = vsub.f32 %v3687_v57, %v2255_v25  ;;  %v2258_v19 = vsub.f32 %v3690_v14, %v2255_v25  ;;  %v1273_v38 = vpack.c.bf16 %v1271_v42, %v1271_v42 }
 0x236   : > { %v1769_v15 = vadd.f32 %v1768_v45, %v1767_v13  ;;  %v1933_v33 = vadd.f32 %v1932_v49, %v1931_v23  ;;  %2781 = vmatprep.mubr.msk.bf16.mxu0 %vm1065_vm14, %v1272_v27 }
 0x237   : > { %v2259_v34 = vmul.f32 1.442695, %v2256_v52  ;;  %v2261_v53 = vmul.f32 1.442695, %v2257_v36  ;;  %v2263_v50 = vmul.f32 1.442695, %v2258_v19  ;;  %2782 = vmatmul.mubr.msk.bf16.vlgmr.msra.gmra.mxu0 %vm1065_vm14, %v1273_v38 }
 0x238   : > { %v1770_v18 = vrot.slane %v1769_v15, 1  ;;  %v1934_v54 = vrot.slane %v1933_v33, 4  ;;  %2794 = vmatpush3.bf16.msra.mxu0 %v3518_v7 }
 0x239   : > { %v2999_v41 = vpop.eup %2998  ;;  %3008 = vpow2.f32 %v2259_v34  ;;  %2880 = vmatprep.subr.msk.bf16.mxu0 %vm878_vm4, %v3512_v5 }
 0x23a   : > { %v1771_v46 = vadd.f32 %v1770_v18, %v1769_v15  ;;  %v1935_v57 = vadd.f32 %v1934_v54, %v1933_v33  ;;  %3010 = vpow2.f32 %v2261_v53  ;;  %v1437_v14 = vmul.f32 %v2999_v41, %v3669_v35 }
 0x23b   : > { %3012 = vpow2.f32 %v2263_v50  ;;  %v1438_v21 = vmul.f32 %v2999_v41, %v3673_v17  ;;  %v1439_v6 = vmul.f32 %v2999_v41, %v3677_v30 }
 0x23c   : > { %3014 = vrcp.f32 %v1771_v46  ;;  %v1936_v43 = vrot.slane %v1935_v57, 2 }
 0x23d   : > { %v3762_v56 = vpop.eup %3000  ;;  %v1440_v39 = vpack.c.bf16 %v1438_v21, %v1437_v14  ;;  %v1441_v13 = vpack.c.bf16 %v1439_v6, %v1439_v6 }
 0x23e   : > { %v3764_v47 = vpop.eup %3002  ;;  %v1937_v20 = vadd.f32 %v1936_v43, %v1935_v57  ;;  %v2097_v48 = vsel %vm1065_vm14, %v3762_v56, 0.0 }
 0x23f   : > { %v3768_v25 = vpop.eup %3004  ;;  %v2098_v35 = vsel %vm1065_vm14, %v3764_v47, 0.0  ;;  %2795 = vmatprep.mubr.msk.bf16.mxu0 %vm1065_vm14, %v1440_v39 }
 0x240   : > { %v3007_v30 = vpop.eup %3006  ;;  %v1938_v17 = vrot.slane %v1937_v20, 1  ;;  %v2099_v42 = vadd.f32 %v2098_v35, %v2097_v48  ;;  %2796 = vmatmul.mubr.msk.bf16.vlgmr.msra.gmra.mxu0 %vm1065_vm14, %v1441_v13  ;;  %v2100_v45 = vsel %vm1065_vm14, %v3768_v25, 0.0 }
 0x241   : > { %2808 = vmatpush3.bf16.msra.mxu0 %v3518_v7  ;;  %v1605_v23 = vmul.f32 %v3007_v30, %v3694_v28  ;;  %v1606_v49 = vmul.f32 %v3007_v30, %v3699_v44  ;;  %v1607_v27 = vmul.f32 %v3007_v30, %v3705_v51 }
 0x242   : > { %v1939_v52 = vadd.f32 %v1938_v17, %v1937_v20  ;;  %v2101_v36 = vadd.f32 %v2100_v45, %v2099_v42  ;;  %2881 = vmatprep.subr.msk.bf16.mxu0 %vm878_vm4, %v3512_v5 }
 0x243   : > { %v1608_v19 = vpack.c.bf16 %v1606_v49, %v1605_v23  ;;  %v1609_v15 = vpack.c.bf16 %v1607_v27, %v1607_v27 }
 0x244   : > { %3016 = vrcp.f32 %v1939_v52  ;;  %v2102_v38 = vrot.slane %v2101_v36, 4 }
 0x245   : > { %2809 = vmatprep.mubr.msk.bf16.mxu0 %vm1065_vm14, %v1608_v19 }
 0x246   : > { %v3009_v33 = vpop.eup %3008  ;;  %v2103_v34 = vadd.f32 %v2102_v38, %v2101_v36 }
 0x247   : > { %v3011_v53 = vpop.eup %3010  ;;  %v2265_v28 = vsel %vm1065_vm14, %v3009_v33, 0.0 }
 0x248   : > { %v3013_v50 = vpop.eup %3012  ;;  %v2104_v44 = vrot.slane %v2103_v34, 2  ;;  %v2266_v51 = vsel %vm1065_vm14, %v3011_v53, 0.0  ;;  %2810 = vmatmul.mubr.msk.bf16.vlgmr.msra.gmra.mxu0 %vm1065_vm14, %v1609_v15 }
 0x249   : > { %v3015_v18 = vpop.eup %3014  ;;  %v2267_v54 = vadd.f32 %v2266_v51, %v2265_v28  ;;  %v2268_v41 = vsel %vm1065_vm14, %v3013_v50, 0.0  ;;  %2822 = vmatpush3.bf16.msra.mxu0 %v3518_v7 }
 0x24a   : > { %v2105_v46 = vadd.f32 %v2104_v44, %v2103_v34  ;;  %v1773_v57 = vmul.f32 %v3015_v18, %v3713_v37  ;;  %v1774_v14 = vmul.f32 %v3015_v18, %v3718_v40  ;;  %2882 = vmatprep.subr.msk.bf16.mxu0 %vm878_vm4, %v3512_v5  ;;  %v1775_v21 = vmul.f32 %v3015_v18, %v3722_v22 }
 0x24b   : > { %v2269_v6 = vadd.f32 %v2268_v41, %v2267_v54 }
 0x24c   : > { %v2106_v43 = vrot.slane %v2105_v46, 1  ;;  %v1776_v39 = vpack.c.bf16 %v1774_v14, %v1773_v57  ;;  %v1777_v13 = vpack.c.bf16 %v1775_v21, %v1775_v21 }
 0x24d   : > { %v2270_v20 = vrot.slane %v2269_v6, 4 }
 0x24e   : > { %v2107_v48 = vadd.f32 %v2106_v43, %v2105_v46  ;;  %2823 = vmatprep.mubr.msk.bf16.mxu0 %vm1065_vm14, %v1776_v39 }
 0x24f   : > { %v2271_v35 = vadd.f32 %v2270_v20, %v2269_v6 }
 0x250   : > { %3018 = vrcp.f32 %v2107_v48  ;;  %2824 = vmatmul.mubr.msk.bf16.vlgmr.msra.gmra.mxu0 %vm1065_vm14, %v1777_v13 }
 0x251   : > { %v3017_v37 = vpop.eup %3016  ;;  %v2272_v30 = vrot.slane %v2271_v35, 2  ;;  %2836 = vmatpush3.bf16.msra.mxu0 %v3518_v7 }
 0x252   : > { %v1941_v40 = vmul.f32 %v3017_v37, %v3736_v16  ;;  %v1942_v22 = vmul.f32 %v3017_v37, %v3739_v32  ;;  %2883 = vmatprep.subr.msk.bf16.mxu0 %vm878_vm4, %v3512_v5  ;;  %v1943_v17 = vmul.f32 %v3017_v37, %v3744_v55 }
 0x253   : > { %v2273_v42 = vadd.f32 %v2272_v30, %v2271_v35 }
 0x254   : > { %v1944_v45 = vpack.c.bf16 %v1942_v22, %v1941_v40  ;;  %v1945_v23 = vpack.c.bf16 %v1943_v17, %v1943_v17 }
 0x255   : > { %v2274_v49 = vrot.slane %v2273_v42, 1 }
 0x256   : > { %2837 = vmatprep.mubr.msk.bf16.mxu0 %vm1065_vm14, %v1944_v45 }
 0x257   : > { %v2275_v27 = vadd.f32 %v2274_v49, %v2273_v42 }
 0x258   : > { %2838 = vmatmul.mubr.msk.bf16.vlgmr.msra.gmra.mxu0 %vm1065_vm14, %v1945_v23 }
 0x259   : > { %3020 = vrcp.f32 %v2275_v27  ;;  %2850 = vmatpush3.bf16.msra.mxu0 %v3518_v7 }
 0x25a   : > { %2884 = vmatprep.subr.msk.bf16.mxu0 %vm878_vm4, %v3512_v5 }
 0x25d   : > { %v3019_v16 = vpop.eup %3018 }
 0x25e   : > { %v2109_v32 = vmul.f32 %v3019_v16, %v3762_v56  ;;  %v2110_v55 = vmul.f32 %v3019_v16, %v3764_v47  ;;  %v2111_v52 = vmul.f32 %v3019_v16, %v3768_v25  ;;  %v2956_v56 = vld [vmem:[%s3956_s4 + $0x8] sm:$0xff]   ;;  %v2957_v47 = vld [vmem:[%s3956_s4] sm:$0xff]  }
 0x25f   : > { %2870 = vmatpush3.bf16.msra.mxu1 %v2956_v56  ;;  %v3824_v25 = vld [vmem:[%s3959_s7] ss:$0 sm:$0xff] }
 0x260   : > { %v2112_v36 = vpack.c.bf16 %v2110_v55, %v2109_v32  ;;  %v2113_v19 = vpack.c.bf16 %v2111_v52, %v2111_v52  ;;  %v746_v18 = vadd.f32 %v3824_v25, %v3485_v31  ;;  %v749_v41 = vadd.f32 %v3824_v25, %v3489_v58 }
 0x261   : > { %v757_v20 = vadd.f32 %v3487_v60, %v3824_v25  ;;  %v762_v58 = vadd.f32 %v3824_v25, %v3493_v62  ;;  %v765_v35 = vadd.f32 %v3824_v25, %v3497_v63  ;;  %v770_v62 = vadd.f32 %v3491_v59, %v3824_v25 }
 0x262   : > { %2851 = vmatprep.mubr.msk.bf16.mxu0 %vm1065_vm14, %v2112_v36  ;;  %v773_v52 = vadd.f32 %v3495_v61, %v3824_v25  ;;  %v778_v36 = vadd.f32 %v3824_v25, %v3501_v1  ;;  %v781_v61 = vadd.f32 %v3824_v25, %v3505_v3 }
 0x263   : > { %2852 = vmatmul.mubr.msk.bf16.vlgmr.msra.gmra.mxu0 %vm1065_vm14, %v2113_v19 }
 0x264   : > { %2864 = vmatpush3.bf16.msra.mxu0 %v3518_v7  ;;  %v3978_v7 = vmov 0.0  }
 0x265   : > { %2871 = vmatprep.subr.bf16.mxu1 %v3978_v7 }
 0x266   : > { %v3021_v38 = vpop.eup %3020  ;;  %2872 = vmatpush3.bf16.msra.mxu1 %v2957_v47 }
 0x267   : > { %v2277_v15 = vmul.f32 %v3021_v38, %v3009_v33  ;;  %v2278_v34 = vmul.f32 %v3021_v38, %v3011_v53  ;;  %v2279_v28 = vmul.f32 %v3021_v38, %v3013_v50  ;;  %v754_v33 = vadd.f32 %v3483_v26, %v3824_v25 }
 0x269   : > { %v2280_v5 = vpack.c.bf16 %v2278_v34, %v2277_v15  ;;  %v2281_v44 = vpack.c.bf16 %v2279_v28, %v2279_v28 }
 0x26b   : > { %2865 = vmatprep.mubr.msk.bf16.mxu0 %vm1065_vm14, %v2280_v5 }
 0x26c   : > { %2866 = vmatmul.mubr.msk.bf16.vlgmr.msra.gmra.mxu0 %vm1065_vm14, %v2281_v44 }
 0x2ee   : > { %v2769_v53 = vpop.f32.mrf.mxu0 }
 0x2ef   : > { %v1162_v50 = vmul.f32 %v2769_v53, %v754_v33 }
 0x2f0   : > { %v1146_v51 = vpop.f32.mrf.mxu0 }
 0x2f1   : > { %v1160_v46 = vmul.f32 %v1146_v51, %v746_v18  ;;  %v1166_v26 = vsel %vm522_vm0, %v1162_v50, 0.0 }
 0x2f2   : > { %v2770_v54 = vpop.f32.mrf.mxu0 }
 0x2f3   : > { %v1163_v21 = vsel %vm522_vm0, %v1160_v46, 0.0  ;;  %v789_v46 = vadd.f32 %v3503_v2, %v3824_v25  ;;  %v794_v2 = vadd.f32 %v3824_v25, %v3520_v8 }
 0x2f4   : > { %v1149_v57 = vpop.f32.mrf.mxu0 }
 0x2f5   : > { %v1161_v14 = vmul.f32 %v1149_v57, %v749_v41  ;;  %v786_v41 = vadd.f32 %v3499_v0, %v3824_v25 }
 0x2f7   : > { %v1164_v6 = vsel %vm522_vm0, %v1161_v14, 0.0  ;;  %v2783_v43 = vpop.f32.mrf.mxu0 }
 0x2f8   : > { %v1165_v39 = vadd.f32 %v1164_v6, %v1163_v21  ;;  %v1330_v22 = vmul.f32 %v2783_v43, %v765_v35 }
 0x2f9   : > { %v1314_v13 = vpop.f32.mrf.mxu0 }
 0x2fa   : > { %v1167_v31 = vadd.f32 %v1166_v26, %v1165_v39  ;;  %v1328_v30 = vmul.f32 %v1314_v13, %v757_v20  ;;  %v1334_v27 = vsel %vm522_vm0, %v1330_v22, 0.0 }
 0x2fb   : > { %v2784_v48 = vpop.f32.mrf.mxu0 }
 0x2fc   : > { %v1168_v37 = vrot.slane %v1167_v31, 4  ;;  %v1331_v45 = vsel %vm522_vm0, %v1328_v30, 0.0 }
 0x2fd   : > { %v1317_v40 = vpop.f32.mrf.mxu0 }
 0x2fe   : > { %v1329_v17 = vmul.f32 %v1317_v40, %v762_v58  ;;  %v1169_v42 = vadd.f32 %v1168_v37, %v1167_v31 }
 0x300   : > { %v1332_v23 = vsel %vm522_vm0, %v1329_v17, 0.0  ;;  %v2797_v49 = vpop.f32.mrf.mxu0  ;;  %v1170_v32 = vrot.slane %v1169_v42, 2 }
 0x301   : > { %v1333_v60 = vadd.f32 %v1332_v23, %v1331_v45  ;;  %v1498_v5 = vmul.f32 %v2797_v49, %v778_v36  ;;  %v797_v45 = vadd.f32 %v3824_v25, %v3527_v10  ;;  %v805_v10 = vadd.f32 %v3525_v9, %v3824_v25 }
 0x302   : > { %v1482_v16 = vpop.f32.mrf.mxu0  ;;  %v1171_v34 = vadd.f32 %v1170_v32, %v1169_v42  ;;  %v802_v42 = vadd.f32 %v3507_v4, %v3824_v25 }
 0x303   : > { %v1335_v63 = vadd.f32 %v1334_v27, %v1333_v60  ;;  %v1496_v38 = vmul.f32 %v1482_v16, %v770_v62  ;;  %v1502_v51 = vsel %vm522_vm0, %v1498_v5, 0.0 }
 0x304   : > { %v2798_v55 = vpop.f32.mrf.mxu0  ;;  %v1172_v50 = vrot.slane %v1171_v34, 1 }
 0x305   : > { %v1336_v19 = vrot.slane %v1335_v63, 4  ;;  %v1499_v59 = vsel %vm522_vm0, %v1496_v38, 0.0 }
 0x306   : > { %v1485_v15 = vpop.f32.mrf.mxu0  ;;  %v1173_v43 = vadd.f32 %v1172_v50, %v1171_v34 }
 0x307   : > { %v1337_v28 = vadd.f32 %v1336_v19, %v1335_v63  ;;  %v1497_v44 = vmul.f32 %v1485_v15, %v773_v52 }
 0x308   : > { %v2811_v56 = vpop.f32.mrf.mxu0 }
 0x309   : > { %v1338_v47 = vrot.slane %v1337_v28, 2  ;;  %v1500_v7 = vsel %vm522_vm0, %v1497_v44, 0.0  ;;  %v1666_v26 = vmul.f32 %v2811_v56, %v789_v46  ;;  %v810_v44 = vadd.f32 %v3824_v25, %v3531_v12 }
 0x30a   : > { %v1501_v33 = vadd.f32 %v1500_v7, %v1499_v59  ;;  %v1650_v53 = vpop.f32.mrf.mxu0  ;;  %v813_v56 = vadd.f32 %v3824_v25, %v3535_v11 }
 0x30b   : > { %v1339_v1 = vadd.f32 %v1338_v47, %v1337_v28  ;;  %v1664_v14 = vmul.f32 %v1650_v53, %v781_v61  ;;  %v1670_v30 = vsel %vm522_vm0, %v1666_v26, 0.0 }
 0x30c   : > { %v1503_v18 = vadd.f32 %v1502_v51, %v1501_v33  ;;  %v2812_v54 = vpop.f32.mrf.mxu0 }
 0x30d   : > { %v1340_v57 = vrot.slane %v1339_v1, 1  ;;  %v1667_v48 = vsel %vm522_vm0, %v1664_v14, 0.0 }
 0x30e   : > { %v1504_v21 = vrot.slane %v1503_v18, 4  ;;  %v1653_v6 = vpop.f32.mrf.mxu0 }
 0x30f   : > { %v1341_v39 = vadd.f32 %v1340_v57, %v1339_v1  ;;  %v1665_v3 = vmul.f32 %v1653_v6, %v786_v41 }
 0x310   : > { %v1505_v13 = vadd.f32 %v1504_v21, %v1503_v18  ;;  %v2825_v20 = vpop.f32.mrf.mxu0  ;;  %v818_v21 = vadd.f32 %v3529_v24, %v3824_v25 }
 0x311   : > { %v2350_v31 = vsel %vm869_vm1, %v1173_v43, %v1341_v39  ;;  %v1668_v58 = vsel %vm522_vm0, %v1665_v3, 0.0  ;;  %v1834_v16 = vmul.f32 %v2825_v20, %v802_v42  ;;  %v821_v39 = vadd.f32 %v3533_v29, %v3824_v25  ;;  %v3979_v3 = vld [vmem:[#allocation6_spill] sm:$0xff] }
 0x312   : > { %v1506_v0 = vrot.slane %v1505_v13, 2  ;;  %v1669_v35 = vadd.f32 %v1668_v58, %v1667_v48  ;;  %v1818_v37 = vpop.f32.mrf.mxu0  ;;  %vm2357_vm1 = vcmask 1045504  }
 0x313   : > { %v1832_v23 = vmul.f32 %v1818_v37, %v794_v2  ;;  %v1838_v15 = vsel %vm522_vm0, %v1834_v16, 0.0 }
 0x314   : > { %v1507_v40 = vadd.f32 %v1506_v0, %v1505_v13  ;;  %v1671_v22 = vadd.f32 %v1670_v30, %v1669_v35  ;;  %v2826_v17 = vpop.f32.mrf.mxu0  ;;  %v826_v13 = vadd.f32 %v3824_v25, %v3979_v3 }
 0x315   : > { %v1835_v55 = vsel %vm522_vm0, %v1832_v23, 0.0  ;;  %v3980_v23 = vld [vmem:[#allocation8_spill] sm:$0xff] }
 0x316   : > { %v1508_v49 = vrot.slane %v1507_v40, 1  ;;  %v1672_v60 = vrot.slane %v1671_v22, 4  ;;  %v1821_v27 = vpop.f32.mrf.mxu0 }
 0x317   : > { %v1833_v62 = vmul.f32 %v1821_v27, %v797_v45 }
 0x318   : > { %v1509_v32 = vadd.f32 %v1508_v49, %v1507_v40  ;;  %v1673_v63 = vadd.f32 %v1672_v60, %v1671_v22  ;;  %v2839_v8 = vpop.f32.mrf.mxu0  ;;  %v829_v49 = vadd.f32 %v3824_v25, %v3980_v23 }
 0x319   : > { %v1836_v52 = vsel %vm522_vm0, %v1833_v62, 0.0  ;;  %v2002_v53 = vmul.f32 %v2839_v8, %v813_v56  ;;  %v3981_v62 = vld [vmem:[#allocation5_spill] sm:$0xff] }
 0x31a   : > { %v2351_v36 = vsel %vm878_vm4, %v2350_v31, %v1509_v32  ;;  %v1674_v19 = vrot.slane %v1673_v63, 2  ;;  %v1837_v4 = vadd.f32 %v1836_v52, %v1835_v55  ;;  %v1986_v38 = vpop.f32.mrf.mxu0  ;;  %v834_v32 = vadd.f32 %v3981_v62, %v3824_v25 }
 0x31b   : > { %v2000_v47 = vmul.f32 %v1986_v38, %v805_v10  ;;  %v2006_v12 = vsel %vm522_vm0, %v2002_v53, 0.0 }
 0x31c   : > { %v1675_v34 = vadd.f32 %v1674_v19, %v1673_v63  ;;  %v1839_v28 = vadd.f32 %v1838_v15, %v1837_v4  ;;  %v2840_v5 = vpop.f32.mrf.mxu0  ;;  %v3982_v63 = vld [vmem:[#allocation7_spill] sm:$0xff] }
 0x31d   : > { %v2003_v9 = vsel %vm522_vm0, %v2000_v47, 0.0  ;;  %v837_v8 = vadd.f32 %v3982_v63, %v3824_v25 }
 0x31e   : > { %v1676_v59 = vrot.slane %v1675_v34, 1  ;;  %v1840_v7 = vrot.slane %v1839_v28, 4  ;;  %v1989_v33 = vpop.f32.mrf.mxu0 }
 0x31f   : > { %v2001_v61 = vmul.f32 %v1989_v33, %v810_v44 }
 0x320   : > { %v1677_v50 = vadd.f32 %v1676_v59, %v1675_v34  ;;  %v1841_v1 = vadd.f32 %v1840_v7, %v1839_v28 }
 0x321   : > { %v2004_v51 = vsel %vm522_vm0, %v2001_v61, 0.0 }
 0x322   : > { %v2352_v18 = vsel %vm887_vm7, %v2351_v36, %v1677_v50  ;;  %v1842_v54 = vrot.slane %v1841_v1, 2  ;;  %v2005_v41 = vadd.f32 %v2004_v51, %v2003_v9 }
 0x323   : > { %v2853_v46 = vpop.f32.mrf.mxu0 }
 0x324   : > { %v1843_v11 = vadd.f32 %v1842_v54, %v1841_v1  ;;  %v2007_v57 = vadd.f32 %v2006_v12, %v2005_v41  ;;  %v2170_v37 = vmul.f32 %v2853_v46, %v826_v13  ;;  %v2595_v54 = vld [vmem:[%s3960_s8] ss:$0 sm:$0xff] }
 0x325   : > { %v2154_v14 = vpop.f32.mrf.mxu0 }
 0x326   : > { %v1844_v6 = vrot.slane %v1843_v11, 1  ;;  %v2008_v43 = vrot.slane %v2007_v57, 4  ;;  %v2168_v48 = vmul.f32 %v2154_v14, %v818_v21  ;;  %v2174_v42 = vsel %vm522_vm0, %v2170_v37, 0.0 }
 0x327   : > { %v2854_v26 = vpop.f32.mrf.mxu0 }
 0x328   : > { %v1845_v20 = vadd.f32 %v1844_v6, %v1843_v11  ;;  %v2009_v31 = vadd.f32 %v2008_v43, %v2007_v57  ;;  %v2171_v24 = vsel %vm522_vm0, %v2168_v48, 0.0 }
 0x329   : > { %v2157_v58 = vpop.f32.mrf.mxu0 }
 0x32a   : > { %v2354_v0 = vsel %vm896_vm10, %v2352_v18, %v1845_v20  ;;  %v2010_v35 = vrot.slane %v2009_v31, 2  ;;  %v2169_v2 = vmul.f32 %v2157_v58, %v821_v39 }
 0x32c   : > { %v2011_v30 = vadd.f32 %v2010_v35, %v2009_v31  ;;  %v2172_v40 = vsel %vm522_vm0, %v2169_v2, 0.0  ;;  %v2867_v22 = vpop.f32.mrf.mxu0 }
 0x32d   : > { %v2173_v29 = vadd.f32 %v2172_v40, %v2171_v24  ;;  %v2338_v38 = vmul.f32 %v2867_v22, %v837_v8 }
 0x32e   : > { %v2012_v17 = vrot.slane %v2011_v30, 1  ;;  %v2322_v45 = vpop.f32.mrf.mxu0 }
 0x32f   : > { %v2175_v60 = vadd.f32 %v2174_v42, %v2173_v29  ;;  %v2336_v52 = vmul.f32 %v2322_v45, %v829_v49  ;;  %v2342_v56 = vsel %vm522_vm0, %v2338_v38, 0.0 }
 0x330   : > { %v2013_v27 = vadd.f32 %v2012_v17, %v2011_v30  ;;  %v2868_v16 = vpop.f32.mrf.mxu0 }
 0x331   : > { %v2176_v55 = vrot.slane %v2175_v60, 4  ;;  %v2339_v34 = vsel %vm522_vm0, %v2336_v52, 0.0 }
 0x332   : > { %v2356_v36 = vsel %vm2355_vm15, %v2354_v0, %v2013_v27  ;;  %v2325_v19 = vpop.f32.mrf.mxu0 }
 0x333   : > { %v2177_v4 = vadd.f32 %v2176_v55, %v2175_v60  ;;  %v2337_v10 = vmul.f32 %v2325_v19, %v834_v32 }
 0x335   : > { %v2178_v15 = vrot.slane %v2177_v4, 2  ;;  %v2340_v28 = vsel %vm522_vm0, %v2337_v10, 0.0 }
 0x336   : > { %v2341_v5 = vadd.f32 %v2340_v28, %v2339_v34 }
 0x337   : > { %v2179_v44 = vadd.f32 %v2178_v15, %v2177_v4 }
 0x338   : > { %v2343_v47 = vadd.f32 %v2342_v56, %v2341_v5 }
 0x339   : > { %v2180_v59 = vrot.slane %v2179_v44, 1 }
 0x33a   : > { %v2344_v25 = vrot.slane %v2343_v47, 4 }
 0x33b   : > { %v2181_v7 = vadd.f32 %v2180_v59, %v2179_v44 }
 0x33c   : > { %v2345_v33 = vadd.f32 %v2344_v25, %v2343_v47 }
 0x33d   : > { %v2358_v53 = vsel %vm2357_vm1, %v2356_v36, %v2181_v7 }
 0x33e   : > { %v2346_v61 = vrot.slane %v2345_v33, 2 }
 0x340   : > { %v2347_v50 = vadd.f32 %v2346_v61, %v2345_v33 }
 0x342   : > { %v2348_v1 = vrot.slane %v2347_v50, 1 }
 0x344   : > { %v2349_v9 = vadd.f32 %v2348_v1, %v2347_v50 }
 0x346   : > { %v2360_v51 = vsel %vm2359_vm2, %v2358_v53, %v2349_v9 }
 0x347   : > { %v2361_v18 = vpack.c.bf16 %v2360_v51, %v2360_v51 }
 0x349   : > { %2874 = vmatmul.mubr.msk.bf16.vlgmr.msra.gmra.mxu1 %vm522_vm0, %v2361_v18 }
 0x409   : > { %v2422_v41 = vpop.f32.mrf.mxu1 }
 0x40a   : > { %v2423_v12 = vadd.f32 %v2595_v54, %v2422_v41 }
 0x40b   : > { %v2875_v46 = vpop.f32.mrf.mxu1 }
 0x40c   : > { %2428 = vst [vmem:[%s407_s29] sm:$0xff] %v2423_v12 }
 0x40d   : > { %v2425_v11 = vpop.f32.mrf.mxu1 }
 0x40e   : > { %3035 = shalt.err (!%p3032_p3)
}
 0x40f   : > { %s3036_s28 = scalar_lea.hbm %s3911_s0, 128  ;;  %s3040_s17 = scalar_lea.hbm %s3964_s12, 256 }
 0x410   : > { %p3037_p4 = scmp.ne.s32.totalorder %s3911_s0, %s3036_s28  ;;  %p3041_p9 = scmp.lt.s32.totalorder %s3911_s0, %s3964_s12 }
 0x411   : > { %p3042_p10 = scmp.lt.s32.totalorder %s3040_s17, %s3036_s28 }
 0x412   : > { %p3038_p7 = pnand %p3037_p4, %p3191_p5 }
 0x413   : > { %p3043_p11 = por %p3042_p10, %p3041_p9 }
 0x414   : > { %p3039_p8 = pneg %p3038_p7 }
 0x416   : > { %p3044_p12 = pnand %p3043_p11, %p3039_p8 }
 0x418   : > { %3047 = shalt.err (!%p3044_p12)
}
 0x419   : > { %2885 = dma.vmem_to_hbm [thread:$0]  (%p3191_p5), %s3913_s15, 128, %s3911_s0, %s2430_s20   ;;  %v2876_v57 = vpop.f32.mrf.mxu1 }
 0x41a PF: > { %p2891_p13 = scmp.ge.s32.totalorder %s3082_s24, 2  ;;  %s2455_s26 = sand.u32 1, %s3070_s21  }
 0x41b   : > { %s2456_s1 = scalar_lea.sflag [#allocation3], %s2455_s26 }
 0x41c   : > { %p2888_p0 = pnand %p2891_p13, %p3195_p6 }
 0x41e   : > { %p2889_p1 = pneg %p2888_p0 }
 0x420   : > { %3065 = dma.done.wait (%p2889_p1), %s2456_s1, 128  }
 0x421   : > { %3067 = vsyncadd (%p2889_p1), %s2456_s1, 4294967168  ;;  %p22_p2 = scmp.ge.s32.totalorder %s3178_s27, 4   ;;  %s3983_s21 = smov %s3074_s22 }
 0x422   : > { %s3984_s22 = smov %s3078_s23  ;;  %s3985_s23 = smov %s3189_s30 }
 0x423   : > { %s3986_s24 = smov %s3178_s27  ;;  %24 = sbr.rel (!%p22_p2) target bundleno = 6 (0x6), region = 103 }
 0x428   :  { %2461 = vsyncpa [#allocation3], 1 }
 0x429   :  { %2463 = vsyncpa [#allocation3 + $0x1], 1 }

</bundles_post_ra>
